<compile_context>
chip_gen: v6e
topology: v6e:2x2x1
jax: 0.10.0
libtpu: 0.0.40
codegen_flags: <defaults>
</compile_context>

<pallas_src>
import math

import jax
import jax.numpy as jnp
from jax.experimental import pallas as pl
from jax.experimental.pallas import tpu as pltpu

# ----------------------- synthetic HyperMLP configuration -----------------------
LATENT_DIM = 3                 # tokenizer.params.latent_dim (default 3)
LATENT_SIZE = (8, 8)           # tokenizer.params.latent_size (default [8, 8])
DIM = 32                       # tokenizer.params.dim (token width)
DATA_SHAPE = (16, 16)          # spatial resolution of shared_coord / INR output
INR_HIDDEN = 32
INR_OUT = 3                    # INR output channels (RGB)
N_GROUPS = 4
MLP_HIDDEN = 64

# INR param shapes: name -> (in_dim + 1, out_dim); last row of each wb is the bias.
PARAM_SHAPES = {
    "wb0": (2 + 1, INR_HIDDEN),
    "wb1": (INR_HIDDEN + 1, INR_HIDDEN),
    "wb2": (INR_HIDDEN + 1, INR_OUT),
}

WTOKEN_RNG = {}
_n = 0
for _name, _shape in PARAM_SHAPES.items():
    _g = min(N_GROUPS, _shape[1])
    assert _shape[1] % _g == 0
    WTOKEN_RNG[_name] = (_n, _n + _g)
    _n += _g
N_WTOKENS = _n

MLP_IN = LATENT_DIM * LATENT_SIZE[0] * LATENT_SIZE[1]
MLP_OUT = N_WTOKENS * DIM
HW = DATA_SHAPE[0] * DATA_SHAPE[1]


# --------------------------------- fused Pallas kernel ---------------------------
def _hyper_mlp_fused_kernel(z_ref, coord_ref, w1_ref, b1_ref, w2_ref, b2_ref,
                            wt_ref, *layer_and_out_refs):
    """Entire HyperMLP.forward for one sample (grid step = one batch element).

    layer_and_out_refs = 6 refs per INR param layer
      (base_wT (out,in), base_bT (out,1), ln_g (1,DIM), ln_b (1,DIM),
       fc_w (DIM,in), fc_b (1,in))
    followed by the output ref (1, INR_OUT, H*W)  [lane-dense, already NCHW].
    """
    o_ref = layer_and_out_refs[-1]
    layer_refs = layer_and_out_refs[:-1]

    # ---- hypernetwork MLP: Linear -> ReLU -> Linear (weight_modifiers stay in VMEM) ----
    z = z_ref[0]                                                        # (1, MLP_IN)
    h = jnp.dot(z, w1_ref[...], preferred_element_type=jnp.float32) + b1_ref[...]
    h = jnp.maximum(h, 0.0)
    wm = jnp.dot(h, w2_ref[...], preferred_element_type=jnp.float32) + b2_ref[...]  # (1, N_WTOKENS*DIM)

    coord_t = coord_ref[...]                                            # (2, HW)

    # ---- per-INR-layer weight construction (all in transposed (out, in) form) ----
    new_wT = []
    new_bT = []
    for idx, (name, shape) in enumerate(PARAM_SHAPES.items()):
        in_dim, out_dim = shape[0] - 1, shape[1]
        l, r = WTOKEN_RNG[name]
        g = r - l
        bwT_ref, bbT_ref, lng_ref, lnb_ref, fcw_ref, fcb_ref = layer_refs[6 * idx: 6 * idx + 6]

        # modified tokens: wtokens[l:r] + weight_modifiers[:, l:r]  -> (g, DIM)
        rows = [wt_ref[t:t + 1, :] + wm[:, t * DIM:(t + 1) * DIM] for t in range(l, r)]
        tokens = jnp.concatenate(rows, axis=0)

        # wtoken_postfc: LayerNorm(DIM) + Linear(DIM, in_dim)
        mu = jnp.mean(tokens, axis=-1, keepdims=True)
        var = jnp.mean((tokens - mu) ** 2, axis=-1, keepdims=True)
        tn = (tokens - mu) * jax.lax.rsqrt(var + 1e-5)
        tn = tn * lng_ref[...] + lnb_ref[...]
        xT = jnp.dot(tn, fcw_ref[...], preferred_element_type=jnp.float32) + fcb_ref[...]  # (g, in)

        # normalize_weights: w * x.repeat(out//g) then F.normalize(dim=in), transposed:
        #   row j of (out, in) uses token (j mod g); L2-normalize over the in (lane) axis.
        reps = out_dim // g
        x_tiled = xT if reps == 1 else jnp.concatenate([xT] * reps, axis=0)   # (out, in)
        prod = bwT_ref[...] * x_tiled                                          # (out, in)
        nrm = jnp.sqrt(jnp.sum(prod * prod, axis=-1, keepdims=True))           # (out, 1)
        new_wT.append(prod / jnp.maximum(nrm, 1e-12))       # torch F.normalize eps clamp
        new_bT.append(bbT_ref[...])                                            # (out, 1)

    # ---- INR eval, transposed: channels on sublanes, spatial H*W=256 on lanes ----
    w0T, w1T, w2T = new_wT
    b0T, b1T, b2T = new_bT

    # layer 0: K=2 contraction as VPU broadcast-multiply-adds (skip the MXU entirely)
    a = w0T[:, 0:1] * coord_t[0:1, :] + w0T[:, 1:2] * coord_t[1:2, :] + b0T    # (32, HW)
    a = jnp.maximum(a, 0.0)
    # layer 1: (32, 32) @ (32, HW) — HW on the MXU N/lane axis
    a = jnp.dot(w1T, a, preferred_element_type=jnp.float32) + b1T
    a = jnp.maximum(a, 0.0)
    # layer 2: (3, 32) @ (32, HW) — lane-dense (3, 256) output, already NCHW
    o_ref[0] = jnp.dot(w2T, a, preferred_element_type=jnp.float32) + b2T


# --------------------------------- wrapper ---------------------------------------
def _const_spec(a):
    nd = a.ndim
    return pl.BlockSpec(a.shape, lambda b, _nd=nd: (0,) * _nd)


def hyper_mlp_forward(params, z, coord):
    """Matches HyperMLP.forward(z) with update_strategy='normalize' (single fused kernel)."""
    B = z.shape[0]
    z3 = z.reshape(B, 1, MLP_IN)                      # z.flatten(start_dim=1), kept 3-D for blocking
    coord_t = coord.reshape(HW, 2).T                  # (2, H*W): shared across the batch

    inputs = [z3, coord_t,
              params["mlp_w1"], params["mlp_b1"], params["mlp_w2"], params["mlp_b2"],
              params["wtokens"]]
    in_specs = [pl.BlockSpec((1, 1, MLP_IN), lambda b: (b, 0, 0)),
                _const_spec(coord_t),
                _const_spec(params["mlp_w1"]), _const_spec(params["mlp_b1"]),
                _const_spec(params["mlp_w2"]), _const_spec(params["mlp_b2"]),
                _const_spec(params["wtokens"])]

    for name, shape in PARAM_SHAPES.items():
        in_dim = shape[0] - 1
        base = params[f"base_{name}"]                 # (in+1, out)
        layer_inputs = [
            base[:-1, :].T,                           # base weight, transposed  (out, in)
            base[-1:, :].T,                           # base bias,   transposed  (out, 1)
            params[f"ln_g_{name}"].reshape(1, DIM),
            params[f"ln_b_{name}"].reshape(1, DIM),
            params[f"fc_w_{name}"],                   # (DIM, in)
            params[f"fc_b_{name}"].reshape(1, in_dim),
        ]
        inputs += layer_inputs
        in_specs += [_const_spec(a) for a in layer_inputs]

    pred = pl.pallas_call(
        _hyper_mlp_fused_kernel,
        grid=(B,),
        in_specs=in_specs,
        out_specs=pl.BlockSpec((1, INR_OUT, HW), lambda b: (b, 0, 0)),
        out_shape=jax.ShapeDtypeStruct((B, INR_OUT, HW), jnp.float32),
        compiler_params=pltpu.CompilerParams(dimension_semantics=("parallel",)),
    )(*inputs)

    # (B, C_out, H*W) is already pred.permute(0, -1, 1, 2); reshape is layout-free.
    return pred.reshape(B, INR_OUT, DATA_SHAPE[0], DATA_SHAPE[1])


# --------------------------------- JAX glue ---------------------------------------
def make_coord_grid(shape):
    """Cell-center coordinate grid mapped to (-1, 1), shape (H, W, 2)."""
    axes = [((jnp.arange(s, dtype=jnp.float32) + 0.5) / s) * 2.0 - 1.0 for s in shape]
    return jnp.stack(jnp.meshgrid(*axes, indexing="ij"), axis=-1)


def init_params(key):
    keys = jax.random.split(key, 4 + 3 * len(PARAM_SHAPES))
    p = {}
    # hypernet MLP
    p["mlp_w1"] = jax.random.normal(keys[0], (MLP_IN, MLP_HIDDEN), jnp.float32) / math.sqrt(MLP_IN)
    p["mlp_b1"] = jnp.zeros((1, MLP_HIDDEN), jnp.float32)
    p["mlp_w2"] = jax.random.normal(keys[1], (MLP_HIDDEN, MLP_OUT), jnp.float32) / math.sqrt(MLP_HIDDEN)
    p["mlp_b2"] = jnp.zeros((1, MLP_OUT), jnp.float32)
    # weight tokens (torch.randn(n_wtokens, dim))
    p["wtokens"] = jax.random.normal(keys[2], (N_WTOKENS, DIM), jnp.float32)
    # per-INR-layer base params + wtoken_postfc (LayerNorm + Linear)
    for i, (name, shape) in enumerate(PARAM_SHAPES.items()):
        in_dim, out_dim = shape[0] - 1, shape[1]
        kb, kw = jax.random.split(keys[3 + i], 2)
        bound = 1.0 / math.sqrt(max(in_dim, 1))
        p[f"base_{name}"] = jax.random.uniform(
            kb, (shape[0], out_dim), jnp.float32, minval=-bound, maxval=bound)
        p[f"ln_g_{name}"] = jnp.ones((DIM,), jnp.float32)
        p[f"ln_b_{name}"] = jnp.zeros((DIM,), jnp.float32)
        p[f"fc_w_{name}"] = jax.random.normal(kw, (DIM, in_dim), jnp.float32) / math.sqrt(DIM)
        p[f"fc_b_{name}"] = jnp.zeros((in_dim,), jnp.float32)
    return p


def hyper_mlp_reference(params, z, coord):
    """Straightforward (non-transposed) JAX port of the PyTorch forward, for validation."""
    B = z.shape[0]
    z_flat = z.reshape(B, -1)
    h = jnp.maximum(z_flat @ params["mlp_w1"] + params["mlp_b1"], 0.0)
    wm = (h @ params["mlp_w2"] + params["mlp_b2"]).reshape(B, N_WTOKENS, DIM)
    inr_p = {}
    for name, shape in PARAM_SHAPES.items():
        in_dim, out_dim = shape[0] - 1, shape[1]
        base = params[f"base_{name}"]
        w = jnp.broadcast_to(base[None, :-1, :], (B, in_dim, out_dim))
        b = jnp.broadcast_to(base[None, -1:, :], (B, 1, out_dim))
        l, r = WTOKEN_RNG[name]
        tokens = params["wtokens"][l:r][None] + wm[:, l:r]
        mu = jnp.mean(tokens, -1, keepdims=True)
        var = jnp.mean((tokens - mu) ** 2, -1, keepdims=True)
        t = (tokens - mu) / jnp.sqrt(var + 1e-5)
        t = t * params[f"ln_g_{name}"] + params[f"ln_b_{name}"]
        x = t @ params[f"fc_w_{name}"] + params[f"fc_b_{name}"]
        x = jnp.swapaxes(x, -1, -2)                            # (B, in, g)
        x_rep = jnp.tile(x, (1, 1, out_dim // x.shape[-1]))
        prod = w * x_rep
        nrm = jnp.sqrt(jnp.sum(prod * prod, axis=1, keepdims=True))
        inr_p[name] = (prod / jnp.maximum(nrm, 1e-12), b)
    H, W = DATA_SHAPE
    c = jnp.broadcast_to(coord.reshape(1, H * W, 2), (B, H * W, 2))
    w0, b0 = inr_p["wb0"]; w1, b1 = inr_p["wb1"]; w2, b2 = inr_p["wb2"]
    a = jnp.maximum(jnp.einsum("bnk,bkm->bnm", c, w0) + b0, 0.0)
    a = jnp.maximum(jnp.einsum("bnk,bkm->bnm", a, w1) + b1, 0.0)
    a = jnp.einsum("bnk,bkm->bnm", a, w2) + b2
    return jnp.transpose(a.reshape(B, H, W, INR_OUT), (0, 3, 1, 2))


if __name__ == "__main__":
    key = jax.random.PRNGKey(0)
    kp, kz = jax.random.split(key)
    params = init_params(kp)
    z = jax.random.normal(kz, (2, LATENT_DIM, LATENT_SIZE[0], LATENT_SIZE[1]), jnp.float32)
    coord = make_coord_grid(DATA_SHAPE)

    out = jax.jit(hyper_mlp_forward)(params, z, coord)
    out = jax.block_until_ready(out)

    assert out.shape == (2, INR_OUT, DATA_SHAPE[0], DATA_SHAPE[1]), out.shape
    assert out.dtype == jnp.float32
    assert bool(jnp.all(jnp.isfinite(out)))

    ref = jax.block_until_ready(jax.jit(hyper_mlp_reference)(params, z, coord))
    assert bool(jnp.allclose(out, ref, atol=2e-2, rtol=2e-2)), float(jnp.max(jnp.abs(out - ref)))
    print("KERNEL_OK")
</pallas_src>

<mosaic_0001>
module attributes {stable_mosaic.version = 11 : i64} {
  func.func @_hyper_mlp_fused_kernel(%arg0: i32, %arg1: memref<1x1x192xf32, #tpu.memory_space<vmem>>, %arg2: memref<2x256xf32, #tpu.memory_space<vmem>>, %arg3: memref<192x64xf32, #tpu.memory_space<vmem>>, %arg4: memref<1x64xf32, #tpu.memory_space<vmem>>, %arg5: memref<64x352xf32, #tpu.memory_space<vmem>>, %arg6: memref<1x352xf32, #tpu.memory_space<vmem>>, %arg7: memref<11x32xf32, #tpu.memory_space<vmem>>, %arg8: memref<32x2xf32, #tpu.memory_space<vmem>>, %arg9: memref<32x1xf32, #tpu.memory_space<vmem>>, %arg10: memref<1x32xf32, #tpu.memory_space<vmem>>, %arg11: memref<1x32xf32, #tpu.memory_space<vmem>>, %arg12: memref<32x2xf32, #tpu.memory_space<vmem>>, %arg13: memref<1x2xf32, #tpu.memory_space<vmem>>, %arg14: memref<32x32xf32, #tpu.memory_space<vmem>>, %arg15: memref<32x1xf32, #tpu.memory_space<vmem>>, %arg16: memref<1x32xf32, #tpu.memory_space<vmem>>, %arg17: memref<1x32xf32, #tpu.memory_space<vmem>>, %arg18: memref<32x32xf32, #tpu.memory_space<vmem>>, %arg19: memref<1x32xf32, #tpu.memory_space<vmem>>, %arg20: memref<3x32xf32, #tpu.memory_space<vmem>>, %arg21: memref<3x1xf32, #tpu.memory_space<vmem>>, %arg22: memref<1x32xf32, #tpu.memory_space<vmem>>, %arg23: memref<1x32xf32, #tpu.memory_space<vmem>>, %arg24: memref<32x32xf32, #tpu.memory_space<vmem>>, %arg25: memref<1x32xf32, #tpu.memory_space<vmem>>, %arg26: memref<1x3x256xf32, #tpu.memory_space<vmem>>) attributes {dimension_semantics = [#tpu.dimension_semantics<parallel>], iteration_bounds = array<i64: 2>, scalar_prefetch = 0 : i64, scratch_operands = 0 : i64, tpu.core_type = #tpu.core_type<tc>, window_params = [{transform_indices = @transform_0, window_bounds = array<i64: 1, 1, 192>}, {pipeline_mode = #tpu.pipeline_mode<synchronous>, transform_indices = @transform_1, window_bounds = array<i64: 2, 256>}, {pipeline_mode = #tpu.pipeline_mode<synchronous>, transform_indices = @transform_2, window_bounds = array<i64: 192, 64>}, {pipeline_mode = #tpu.pipeline_mode<synchronous>, transform_indices = @transform_3, window_bounds = array<i64: 1, 64>}, {pipeline_mode = #tpu.pipeline_mode<synchronous>, transform_indices = @transform_4, window_bounds = array<i64: 64, 352>}, {pipeline_mode = #tpu.pipeline_mode<synchronous>, transform_indices = @transform_5, window_bounds = array<i64: 1, 352>}, {pipeline_mode = #tpu.pipeline_mode<synchronous>, transform_indices = @transform_6, window_bounds = array<i64: 11, 32>}, {pipeline_mode = #tpu.pipeline_mode<synchronous>, transform_indices = @transform_7, window_bounds = array<i64: 32, 2>}, {pipeline_mode = #tpu.pipeline_mode<synchronous>, transform_indices = @transform_8, window_bounds = array<i64: 32, 1>}, {pipeline_mode = #tpu.pipeline_mode<synchronous>, transform_indices = @transform_9, window_bounds = array<i64: 1, 32>}, {pipeline_mode = #tpu.pipeline_mode<synchronous>, transform_indices = @transform_10, window_bounds = array<i64: 1, 32>}, {pipeline_mode = #tpu.pipeline_mode<synchronous>, transform_indices = @transform_11, window_bounds = array<i64: 32, 2>}, {pipeline_mode = #tpu.pipeline_mode<synchronous>, transform_indices = @transform_12, window_bounds = array<i64: 1, 2>}, {pipeline_mode = #tpu.pipeline_mode<synchronous>, transform_indices = @transform_13, window_bounds = array<i64: 32, 32>}, {pipeline_mode = #tpu.pipeline_mode<synchronous>, transform_indices = @transform_14, window_bounds = array<i64: 32, 1>}, {pipeline_mode = #tpu.pipeline_mode<synchronous>, transform_indices = @transform_15, window_bounds = array<i64: 1, 32>}, {pipeline_mode = #tpu.pipeline_mode<synchronous>, transform_indices = @transform_16, window_bounds = array<i64: 1, 32>}, {pipeline_mode = #tpu.pipeline_mode<synchronous>, transform_indices = @transform_17, window_bounds = array<i64: 32, 32>}, {pipeline_mode = #tpu.pipeline_mode<synchronous>, transform_indices = @transform_18, window_bounds = array<i64: 1, 32>}, {pipeline_mode = #tpu.pipeline_mode<synchronous>, transform_indices = @transform_19, window_bounds = array<i64: 3, 32>}, {pipeline_mode = #tpu.pipeline_mode<synchronous>, transform_indices = @transform_20, window_bounds = array<i64: 3, 1>}, {pipeline_mode = #tpu.pipeline_mode<synchronous>, transform_indices = @transform_21, window_bounds = array<i64: 1, 32>}, {pipeline_mode = #tpu.pipeline_mode<synchronous>, transform_indices = @transform_22, window_bounds = array<i64: 1, 32>}, {pipeline_mode = #tpu.pipeline_mode<synchronous>, transform_indices = @transform_23, window_bounds = array<i64: 32, 32>}, {pipeline_mode = #tpu.pipeline_mode<synchronous>, transform_indices = @transform_24, window_bounds = array<i64: 1, 32>}, {transform_indices = @transform_25, window_bounds = array<i64: 1, 3, 256>}]} {
    %c0 = arith.constant 0 : index
    %c0_0 = arith.constant 0 : index
    %c0_1 = arith.constant 0 : index
    %0 = vector.load %arg1[%c0, %c0_0, %c0_1] : memref<1x1x192xf32, #tpu.memory_space<vmem>>, vector<1x1x192xf32>
    %1 = vector.shape_cast %0 : vector<1x1x192xf32> to vector<1x192xf32>
    %c0_2 = arith.constant 0 : index
    %c0_3 = arith.constant 0 : index
    %2 = vector.load %arg3[%c0_2, %c0_3] : memref<192x64xf32, #tpu.memory_space<vmem>>, vector<192x64xf32>
    %cst = arith.constant dense<0.000000e+00> : vector<1x64xf32>
    %3 = tpu.matmul %1, %2, %cst {dimension_numbers = #tpu.dot_dimension_numbers<[1], [0], [0], [1], [0, 0, 1, 1], [], []>} : vector<1x192xf32>, vector<192x64xf32>, vector<1x64xf32> -> vector<1x64xf32>
    %c0_4 = arith.constant 0 : index
    %c0_5 = arith.constant 0 : index
    %4 = vector.load %arg4[%c0_4, %c0_5] : memref<1x64xf32, #tpu.memory_space<vmem>>, vector<1x64xf32>
    %5 = arith.addf %3, %4 : vector<1x64xf32>
    %cst_6 = arith.constant 0.000000e+00 : f32
    %6 = vector.broadcast %cst_6 : f32 to vector<1x64xf32>
    %7 = arith.maximumf %5, %6 : vector<1x64xf32>
    %c0_7 = arith.constant 0 : index
    %c0_8 = arith.constant 0 : index
    %8 = vector.load %arg5[%c0_7, %c0_8] : memref<64x352xf32, #tpu.memory_space<vmem>>, vector<64x352xf32>
    %cst_9 = arith.constant dense<0.000000e+00> : vector<1x352xf32>
    %9 = tpu.matmul %7, %8, %cst_9 {dimension_numbers = #tpu.dot_dimension_numbers<[1], [0], [0], [1], [0, 0, 1, 1], [], []>} : vector<1x64xf32>, vector<64x352xf32>, vector<1x352xf32> -> vector<1x352xf32>
    %c0_10 = arith.constant 0 : index
    %c0_11 = arith.constant 0 : index
    %10 = vector.load %arg6[%c0_10, %c0_11] : memref<1x352xf32, #tpu.memory_space<vmem>>, vector<1x352xf32>
    %11 = arith.addf %9, %10 : vector<1x352xf32>
    %c0_12 = arith.constant 0 : index
    %c0_13 = arith.constant 0 : index
    %12 = vector.load %arg2[%c0_12, %c0_13] : memref<2x256xf32, #tpu.memory_space<vmem>>, vector<2x256xf32>
    %c0_14 = arith.constant 0 : index
    %c0_15 = arith.constant 0 : index
    %13 = vector.load %arg7[%c0_14, %c0_15] : memref<11x32xf32, #tpu.memory_space<vmem>>, vector<1x32xf32>
    %14 = vector.extract_strided_slice %11 {offsets = [0, 0], sizes = [1, 32], strides = [1, 1]} : vector<1x352xf32> to vector<1x32xf32>
    %15 = arith.addf %13, %14 : vector<1x32xf32>
    %c1 = arith.constant 1 : index
    %c0_16 = arith.constant 0 : index
    %16 = vector.load %arg7[%c1, %c0_16] : memref<11x32xf32, #tpu.memory_space<vmem>>, vector<1x32xf32>
    %17 = vector.extract_strided_slice %11 {offsets = [0, 32], sizes = [1, 32], strides = [1, 1]} : vector<1x352xf32> to vector<1x32xf32>
    %18 = arith.addf %16, %17 : vector<1x32xf32>
    %c2 = arith.constant 2 : index
    %c0_17 = arith.constant 0 : index
    %19 = vector.load %arg7[%c2, %c0_17] : memref<11x32xf32, #tpu.memory_space<vmem>>, vector<1x32xf32>
    %20 = vector.extract_strided_slice %11 {offsets = [0, 64], sizes = [1, 32], strides = [1, 1]} : vector<1x352xf32> to vector<1x32xf32>
    %21 = arith.addf %19, %20 : vector<1x32xf32>
    %c3 = arith.constant 3 : index
    %c0_18 = arith.constant 0 : index
    %22 = vector.load %arg7[%c3, %c0_18] : memref<11x32xf32, #tpu.memory_space<vmem>>, vector<1x32xf32>
    %23 = vector.extract_strided_slice %11 {offsets = [0, 96], sizes = [1, 32], strides = [1, 1]} : vector<1x352xf32> to vector<1x32xf32>
    %24 = arith.addf %22, %23 : vector<1x32xf32>
    %25 = tpu.concatenate %15, %18, %21, %24 in 0 : vector<1x32xf32>, vector<1x32xf32>, vector<1x32xf32>, vector<1x32xf32> -> vector<4x32xf32>
    %cst_19 = arith.constant dense<0.000000e+00> : vector<4xf32>
    %26 = vector.multi_reduction <add>, %25, %cst_19 [1] : vector<4x32xf32> to vector<4xf32>
    %27 = vector.shape_cast %26 : vector<4xf32> to vector<4x1xf32>
    %cst_20 = arith.constant 3.200000e+01 : f32
    %28 = vector.broadcast %cst_20 : f32 to vector<4x1xf32>
    %29 = arith.divf %27, %28 : vector<4x1xf32>
    %30 = vector.broadcast %29 : vector<4x1xf32> to vector<4x32xf32>
    %31 = arith.subf %25, %30 : vector<4x32xf32>
    %32 = arith.mulf %31, %31 : vector<4x32xf32>
    %cst_21 = arith.constant dense<0.000000e+00> : vector<4xf32>
    %33 = vector.multi_reduction <add>, %32, %cst_21 [1] : vector<4x32xf32> to vector<4xf32>
    %34 = vector.shape_cast %33 : vector<4xf32> to vector<4x1xf32>
    %cst_22 = arith.constant 3.200000e+01 : f32
    %35 = vector.broadcast %cst_22 : f32 to vector<4x1xf32>
    %36 = arith.divf %34, %35 : vector<4x1xf32>
    %37 = vector.broadcast %29 : vector<4x1xf32> to vector<4x32xf32>
    %38 = arith.subf %25, %37 : vector<4x32xf32>
    %cst_23 = arith.constant 9.99999974E-6 : f32
    %39 = vector.broadcast %cst_23 : f32 to vector<4x1xf32>
    %40 = arith.addf %36, %39 : vector<4x1xf32>
    %41 = math.rsqrt %40 : vector<4x1xf32>
    %42 = vector.broadcast %41 : vector<4x1xf32> to vector<4x32xf32>
    %43 = arith.mulf %38, %42 : vector<4x32xf32>
    %c0_24 = arith.constant 0 : index
    %c0_25 = arith.constant 0 : index
    %44 = vector.load %arg10[%c0_24, %c0_25] : memref<1x32xf32, #tpu.memory_space<vmem>>, vector<1x32xf32>
    %45 = vector.broadcast %44 : vector<1x32xf32> to vector<4x32xf32>
    %46 = arith.mulf %43, %45 : vector<4x32xf32>
    %c0_26 = arith.constant 0 : index
    %c0_27 = arith.constant 0 : index
    %47 = vector.load %arg11[%c0_26, %c0_27] : memref<1x32xf32, #tpu.memory_space<vmem>>, vector<1x32xf32>
    %48 = vector.broadcast %47 : vector<1x32xf32> to vector<4x32xf32>
    %49 = arith.addf %46, %48 : vector<4x32xf32>
    %c0_28 = arith.constant 0 : index
    %c0_29 = arith.constant 0 : index
    %50 = vector.load %arg12[%c0_28, %c0_29] : memref<32x2xf32, #tpu.memory_space<vmem>>, vector<32x2xf32>
    %cst_30 = arith.constant dense<0.000000e+00> : vector<4x2xf32>
    %51 = tpu.matmul %49, %50, %cst_30 {dimension_numbers = #tpu.dot_dimension_numbers<[1], [0], [0], [1], [0, 0, 1, 1], [], []>} : vector<4x32xf32>, vector<32x2xf32>, vector<4x2xf32> -> vector<4x2xf32>
    %c0_31 = arith.constant 0 : index
    %c0_32 = arith.constant 0 : index
    %52 = vector.load %arg13[%c0_31, %c0_32] : memref<1x2xf32, #tpu.memory_space<vmem>>, vector<1x2xf32>
    %53 = vector.broadcast %52 : vector<1x2xf32> to vector<4x2xf32>
    %54 = arith.addf %51, %53 : vector<4x2xf32>
    %55 = tpu.concatenate %54, %54, %54, %54, %54, %54, %54, %54 in 0 : vector<4x2xf32>, vector<4x2xf32>, vector<4x2xf32>, vector<4x2xf32>, vector<4x2xf32>, vector<4x2xf32>, vector<4x2xf32>, vector<4x2xf32> -> vector<32x2xf32>
    %c0_33 = arith.constant 0 : index
    %c0_34 = arith.constant 0 : index
    %56 = vector.load %arg8[%c0_33, %c0_34] : memref<32x2xf32, #tpu.memory_space<vmem>>, vector<32x2xf32>
    %57 = arith.mulf %56, %55 : vector<32x2xf32>
    %58 = arith.mulf %57, %57 : vector<32x2xf32>
    %cst_35 = arith.constant dense<0.000000e+00> : vector<32xf32>
    %59 = vector.multi_reduction <add>, %58, %cst_35 [1] : vector<32x2xf32> to vector<32xf32>
    %60 = vector.shape_cast %59 : vector<32xf32> to vector<32x1xf32>
    %61 = math.sqrt %60 : vector<32x1xf32>
    %cst_36 = arith.constant 9.99999996E-13 : f32
    %62 = vector.broadcast %cst_36 : f32 to vector<32x1xf32>
    %63 = arith.maximumf %61, %62 : vector<32x1xf32>
    %64 = vector.broadcast %63 : vector<32x1xf32> to vector<32x2xf32>
    %65 = arith.divf %57, %64 : vector<32x2xf32>
    %c0_37 = arith.constant 0 : index
    %c0_38 = arith.constant 0 : index
    %66 = vector.load %arg9[%c0_37, %c0_38] : memref<32x1xf32, #tpu.memory_space<vmem>>, vector<32x1xf32>
    %c4 = arith.constant 4 : index
    %c0_39 = arith.constant 0 : index
    %67 = vector.load %arg7[%c4, %c0_39] : memref<11x32xf32, #tpu.memory_space<vmem>>, vector<1x32xf32>
    %68 = vector.extract_strided_slice %11 {offsets = [0, 128], sizes = [1, 32], strides = [1, 1]} : vector<1x352xf32> to vector<1x32xf32>
    %69 = arith.addf %67, %68 : vector<1x32xf32>
    %c5 = arith.constant 5 : index
    %c0_40 = arith.constant 0 : index
    %70 = vector.load %arg7[%c5, %c0_40] : memref<11x32xf32, #tpu.memory_space<vmem>>, vector<1x32xf32>
    %71 = vector.extract_strided_slice %11 {offsets = [0, 160], sizes = [1, 32], strides = [1, 1]} : vector<1x352xf32> to vector<1x32xf32>
    %72 = arith.addf %70, %71 : vector<1x32xf32>
    %c6 = arith.constant 6 : index
    %c0_41 = arith.constant 0 : index
    %73 = vector.load %arg7[%c6, %c0_41] : memref<11x32xf32, #tpu.memory_space<vmem>>, vector<1x32xf32>
    %74 = vector.extract_strided_slice %11 {offsets = [0, 192], sizes = [1, 32], strides = [1, 1]} : vector<1x352xf32> to vector<1x32xf32>
    %75 = arith.addf %73, %74 : vector<1x32xf32>
    %c7 = arith.constant 7 : index
    %c0_42 = arith.constant 0 : index
    %76 = vector.load %arg7[%c7, %c0_42] : memref<11x32xf32, #tpu.memory_space<vmem>>, vector<1x32xf32>
    %77 = vector.extract_strided_slice %11 {offsets = [0, 224], sizes = [1, 32], strides = [1, 1]} : vector<1x352xf32> to vector<1x32xf32>
    %78 = arith.addf %76, %77 : vector<1x32xf32>
    %79 = tpu.concatenate %69, %72, %75, %78 in 0 : vector<1x32xf32>, vector<1x32xf32>, vector<1x32xf32>, vector<1x32xf32> -> vector<4x32xf32>
    %cst_43 = arith.constant dense<0.000000e+00> : vector<4xf32>
    %80 = vector.multi_reduction <add>, %79, %cst_43 [1] : vector<4x32xf32> to vector<4xf32>
    %81 = vector.shape_cast %80 : vector<4xf32> to vector<4x1xf32>
    %cst_44 = arith.constant 3.200000e+01 : f32
    %82 = vector.broadcast %cst_44 : f32 to vector<4x1xf32>
    %83 = arith.divf %81, %82 : vector<4x1xf32>
    %84 = vector.broadcast %83 : vector<4x1xf32> to vector<4x32xf32>
    %85 = arith.subf %79, %84 : vector<4x32xf32>
    %86 = arith.mulf %85, %85 : vector<4x32xf32>
    %cst_45 = arith.constant dense<0.000000e+00> : vector<4xf32>
    %87 = vector.multi_reduction <add>, %86, %cst_45 [1] : vector<4x32xf32> to vector<4xf32>
    %88 = vector.shape_cast %87 : vector<4xf32> to vector<4x1xf32>
    %cst_46 = arith.constant 3.200000e+01 : f32
    %89 = vector.broadcast %cst_46 : f32 to vector<4x1xf32>
    %90 = arith.divf %88, %89 : vector<4x1xf32>
    %91 = vector.broadcast %83 : vector<4x1xf32> to vector<4x32xf32>
    %92 = arith.subf %79, %91 : vector<4x32xf32>
    %cst_47 = arith.constant 9.99999974E-6 : f32
    %93 = vector.broadcast %cst_47 : f32 to vector<4x1xf32>
    %94 = arith.addf %90, %93 : vector<4x1xf32>
    %95 = math.rsqrt %94 : vector<4x1xf32>
    %96 = vector.broadcast %95 : vector<4x1xf32> to vector<4x32xf32>
    %97 = arith.mulf %92, %96 : vector<4x32xf32>
    %c0_48 = arith.constant 0 : index
    %c0_49 = arith.constant 0 : index
    %98 = vector.load %arg16[%c0_48, %c0_49] : memref<1x32xf32, #tpu.memory_space<vmem>>, vector<1x32xf32>
    %99 = vector.broadcast %98 : vector<1x32xf32> to vector<4x32xf32>
    %100 = arith.mulf %97, %99 : vector<4x32xf32>
    %c0_50 = arith.constant 0 : index
    %c0_51 = arith.constant 0 : index
    %101 = vector.load %arg17[%c0_50, %c0_51] : memref<1x32xf32, #tpu.memory_space<vmem>>, vector<1x32xf32>
    %102 = vector.broadcast %101 : vector<1x32xf32> to vector<4x32xf32>
    %103 = arith.addf %100, %102 : vector<4x32xf32>
    %c0_52 = arith.constant 0 : index
    %c0_53 = arith.constant 0 : index
    %104 = vector.load %arg18[%c0_52, %c0_53] : memref<32x32xf32, #tpu.memory_space<vmem>>, vector<32x32xf32>
    %cst_54 = arith.constant dense<0.000000e+00> : vector<4x32xf32>
    %105 = tpu.matmul %103, %104, %cst_54 {dimension_numbers = #tpu.dot_dimension_numbers<[1], [0], [0], [1], [0, 0, 1, 1], [], []>} : vector<4x32xf32>, vector<32x32xf32>, vector<4x32xf32> -> vector<4x32xf32>
    %c0_55 = arith.constant 0 : index
    %c0_56 = arith.constant 0 : index
    %106 = vector.load %arg19[%c0_55, %c0_56] : memref<1x32xf32, #tpu.memory_space<vmem>>, vector<1x32xf32>
    %107 = vector.broadcast %106 : vector<1x32xf32> to vector<4x32xf32>
    %108 = arith.addf %105, %107 : vector<4x32xf32>
    %109 = tpu.concatenate %108, %108, %108, %108, %108, %108, %108, %108 in 0 : vector<4x32xf32>, vector<4x32xf32>, vector<4x32xf32>, vector<4x32xf32>, vector<4x32xf32>, vector<4x32xf32>, vector<4x32xf32>, vector<4x32xf32> -> vector<32x32xf32>
    %c0_57 = arith.constant 0 : index
    %c0_58 = arith.constant 0 : index
    %110 = vector.load %arg14[%c0_57, %c0_58] : memref<32x32xf32, #tpu.memory_space<vmem>>, vector<32x32xf32>
    %111 = arith.mulf %110, %109 : vector<32x32xf32>
    %112 = arith.mulf %111, %111 : vector<32x32xf32>
    %cst_59 = arith.constant dense<0.000000e+00> : vector<32xf32>
    %113 = vector.multi_reduction <add>, %112, %cst_59 [1] : vector<32x32xf32> to vector<32xf32>
    %114 = vector.shape_cast %113 : vector<32xf32> to vector<32x1xf32>
    %115 = math.sqrt %114 : vector<32x1xf32>
    %cst_60 = arith.constant 9.99999996E-13 : f32
    %116 = vector.broadcast %cst_60 : f32 to vector<32x1xf32>
    %117 = arith.maximumf %115, %116 : vector<32x1xf32>
    %118 = vector.broadcast %117 : vector<32x1xf32> to vector<32x32xf32>
    %119 = arith.divf %111, %118 : vector<32x32xf32>
    %c0_61 = arith.constant 0 : index
    %c0_62 = arith.constant 0 : index
    %120 = vector.load %arg15[%c0_61, %c0_62] : memref<32x1xf32, #tpu.memory_space<vmem>>, vector<32x1xf32>
    %c8 = arith.constant 8 : index
    %c0_63 = arith.constant 0 : index
    %121 = vector.load %arg7[%c8, %c0_63] : memref<11x32xf32, #tpu.memory_space<vmem>>, vector<1x32xf32>
    %122 = vector.extract_strided_slice %11 {offsets = [0, 256], sizes = [1, 32], strides = [1, 1]} : vector<1x352xf32> to vector<1x32xf32>
    %123 = arith.addf %121, %122 : vector<1x32xf32>
    %c9 = arith.constant 9 : index
    %c0_64 = arith.constant 0 : index
    %124 = vector.load %arg7[%c9, %c0_64] : memref<11x32xf32, #tpu.memory_space<vmem>>, vector<1x32xf32>
    %125 = vector.extract_strided_slice %11 {offsets = [0, 288], sizes = [1, 32], strides = [1, 1]} : vector<1x352xf32> to vector<1x32xf32>
    %126 = arith.addf %124, %125 : vector<1x32xf32>
    %c10 = arith.constant 10 : index
    %c0_65 = arith.constant 0 : index
    %127 = vector.load %arg7[%c10, %c0_65] : memref<11x32xf32, #tpu.memory_space<vmem>>, vector<1x32xf32>
    %128 = vector.extract_strided_slice %11 {offsets = [0, 320], sizes = [1, 32], strides = [1, 1]} : vector<1x352xf32> to vector<1x32xf32>
    %129 = arith.addf %127, %128 : vector<1x32xf32>
    %130 = tpu.concatenate %123, %126, %129 in 0 : vector<1x32xf32>, vector<1x32xf32>, vector<1x32xf32> -> vector<3x32xf32>
    %cst_66 = arith.constant dense<0.000000e+00> : vector<3xf32>
    %131 = vector.multi_reduction <add>, %130, %cst_66 [1] : vector<3x32xf32> to vector<3xf32>
    %132 = vector.shape_cast %131 : vector<3xf32> to vector<3x1xf32>
    %cst_67 = arith.constant 3.200000e+01 : f32
    %133 = vector.broadcast %cst_67 : f32 to vector<3x1xf32>
    %134 = arith.divf %132, %133 : vector<3x1xf32>
    %135 = vector.broadcast %134 : vector<3x1xf32> to vector<3x32xf32>
    %136 = arith.subf %130, %135 : vector<3x32xf32>
    %137 = arith.mulf %136, %136 : vector<3x32xf32>
    %cst_68 = arith.constant dense<0.000000e+00> : vector<3xf32>
    %138 = vector.multi_reduction <add>, %137, %cst_68 [1] : vector<3x32xf32> to vector<3xf32>
    %139 = vector.shape_cast %138 : vector<3xf32> to vector<3x1xf32>
    %cst_69 = arith.constant 3.200000e+01 : f32
    %140 = vector.broadcast %cst_69 : f32 to vector<3x1xf32>
    %141 = arith.divf %139, %140 : vector<3x1xf32>
    %142 = vector.broadcast %134 : vector<3x1xf32> to vector<3x32xf32>
    %143 = arith.subf %130, %142 : vector<3x32xf32>
    %cst_70 = arith.constant 9.99999974E-6 : f32
    %144 = vector.broadcast %cst_70 : f32 to vector<3x1xf32>
    %145 = arith.addf %141, %144 : vector<3x1xf32>
    %146 = math.rsqrt %145 : vector<3x1xf32>
    %147 = vector.broadcast %146 : vector<3x1xf32> to vector<3x32xf32>
    %148 = arith.mulf %143, %147 : vector<3x32xf32>
    %c0_71 = arith.constant 0 : index
    %c0_72 = arith.constant 0 : index
    %149 = vector.load %arg22[%c0_71, %c0_72] : memref<1x32xf32, #tpu.memory_space<vmem>>, vector<1x32xf32>
    %150 = vector.broadcast %149 : vector<1x32xf32> to vector<3x32xf32>
    %151 = arith.mulf %148, %150 : vector<3x32xf32>
    %c0_73 = arith.constant 0 : index
    %c0_74 = arith.constant 0 : index
    %152 = vector.load %arg23[%c0_73, %c0_74] : memref<1x32xf32, #tpu.memory_space<vmem>>, vector<1x32xf32>
    %153 = vector.broadcast %152 : vector<1x32xf32> to vector<3x32xf32>
    %154 = arith.addf %151, %153 : vector<3x32xf32>
    %c0_75 = arith.constant 0 : index
    %c0_76 = arith.constant 0 : index
    %155 = vector.load %arg24[%c0_75, %c0_76] : memref<32x32xf32, #tpu.memory_space<vmem>>, vector<32x32xf32>
    %cst_77 = arith.constant dense<0.000000e+00> : vector<3x32xf32>
    %156 = tpu.matmul %154, %155, %cst_77 {dimension_numbers = #tpu.dot_dimension_numbers<[1], [0], [0], [1], [0, 0, 1, 1], [], []>} : vector<3x32xf32>, vector<32x32xf32>, vector<3x32xf32> -> vector<3x32xf32>
    %c0_78 = arith.constant 0 : index
    %c0_79 = arith.constant 0 : index
    %157 = vector.load %arg25[%c0_78, %c0_79] : memref<1x32xf32, #tpu.memory_space<vmem>>, vector<1x32xf32>
    %158 = vector.broadcast %157 : vector<1x32xf32> to vector<3x32xf32>
    %159 = arith.addf %156, %158 : vector<3x32xf32>
    %c0_80 = arith.constant 0 : index
    %c0_81 = arith.constant 0 : index
    %160 = vector.load %arg20[%c0_80, %c0_81] : memref<3x32xf32, #tpu.memory_space<vmem>>, vector<3x32xf32>
    %161 = arith.mulf %160, %159 : vector<3x32xf32>
    %162 = arith.mulf %161, %161 : vector<3x32xf32>
    %cst_82 = arith.constant dense<0.000000e+00> : vector<3xf32>
    %163 = vector.multi_reduction <add>, %162, %cst_82 [1] : vector<3x32xf32> to vector<3xf32>
    %164 = vector.shape_cast %163 : vector<3xf32> to vector<3x1xf32>
    %165 = math.sqrt %164 : vector<3x1xf32>
    %cst_83 = arith.constant 9.99999996E-13 : f32
    %166 = vector.broadcast %cst_83 : f32 to vector<3x1xf32>
    %167 = arith.maximumf %165, %166 : vector<3x1xf32>
    %168 = vector.broadcast %167 : vector<3x1xf32> to vector<3x32xf32>
    %169 = arith.divf %161, %168 : vector<3x32xf32>
    %c0_84 = arith.constant 0 : index
    %c0_85 = arith.constant 0 : index
    %170 = vector.load %arg21[%c0_84, %c0_85] : memref<3x1xf32, #tpu.memory_space<vmem>>, vector<3x1xf32>
    %171 = vector.extract_strided_slice %65 {offsets = [0, 0], sizes = [32, 1], strides = [1, 1]} : vector<32x2xf32> to vector<32x1xf32>
    %172 = vector.extract_strided_slice %12 {offsets = [0, 0], sizes = [1, 256], strides = [1, 1]} : vector<2x256xf32> to vector<1x256xf32>
    %173 = vector.broadcast %171 : vector<32x1xf32> to vector<32x256xf32>
    %174 = vector.broadcast %172 : vector<1x256xf32> to vector<32x256xf32>
    %175 = arith.mulf %173, %174 : vector<32x256xf32>
    %176 = vector.extract_strided_slice %65 {offsets = [0, 1], sizes = [32, 1], strides = [1, 1]} : vector<32x2xf32> to vector<32x1xf32>
    %177 = vector.extract_strided_slice %12 {offsets = [1, 0], sizes = [1, 256], strides = [1, 1]} : vector<2x256xf32> to vector<1x256xf32>
    %178 = vector.broadcast %176 : vector<32x1xf32> to vector<32x256xf32>
    %179 = vector.broadcast %177 : vector<1x256xf32> to vector<32x256xf32>
    %180 = arith.mulf %178, %179 : vector<32x256xf32>
    %181 = arith.addf %175, %180 : vector<32x256xf32>
    %182 = vector.broadcast %66 : vector<32x1xf32> to vector<32x256xf32>
    %183 = arith.addf %181, %182 : vector<32x256xf32>
    %cst_86 = arith.constant 0.000000e+00 : f32
    %184 = vector.broadcast %cst_86 : f32 to vector<32x256xf32>
    %185 = arith.maximumf %183, %184 : vector<32x256xf32>
    %cst_87 = arith.constant dense<0.000000e+00> : vector<32x256xf32>
    %186 = tpu.matmul %119, %185, %cst_87 {dimension_numbers = #tpu.dot_dimension_numbers<[1], [0], [0], [1], [0, 0, 1, 1], [], []>} : vector<32x32xf32>, vector<32x256xf32>, vector<32x256xf32> -> vector<32x256xf32>
    %187 = vector.broadcast %120 : vector<32x1xf32> to vector<32x256xf32>
    %188 = arith.addf %186, %187 : vector<32x256xf32>
    %cst_88 = arith.constant 0.000000e+00 : f32
    %189 = vector.broadcast %cst_88 : f32 to vector<32x256xf32>
    %190 = arith.maximumf %188, %189 : vector<32x256xf32>
    %cst_89 = arith.constant dense<0.000000e+00> : vector<3x256xf32>
    %191 = tpu.matmul %169, %190, %cst_89 {dimension_numbers = #tpu.dot_dimension_numbers<[1], [0], [0], [1], [0, 0, 1, 1], [], []>} : vector<3x32xf32>, vector<32x256xf32>, vector<3x256xf32> -> vector<3x256xf32>
    %192 = vector.broadcast %170 : vector<3x1xf32> to vector<3x256xf32>
    %193 = arith.addf %191, %192 : vector<3x256xf32>
    %c0_90 = arith.constant 0 : index
    %c0_91 = arith.constant 0 : index
    %c0_92 = arith.constant 0 : index
    %194 = vector.load %arg26[%c0_90, %c0_91, %c0_92] : memref<1x3x256xf32, #tpu.memory_space<vmem>>, vector<1x3x256xf32>
    %195 = vector.shape_cast %194 : vector<1x3x256xf32> to vector<3x256xf32>
    %196 = vector.shape_cast %193 : vector<3x256xf32> to vector<1x3x256xf32>
    tpu.vector_store %arg26[%c0_90, %c0_91, %c0_92], %196 {strides = array<i32>} : memref<1x3x256xf32, #tpu.memory_space<vmem>>, vector<1x3x256xf32>,
    return
  }
  func.func @transform_0(%arg0: i32) -> (i32, i32, i32) {
    %c0_i32 = arith.constant 0 : i32
    %c0_i32_0 = arith.constant 0 : i32
    %c0_i32_1 = arith.constant 0 : i32
    return %arg0, %c0_i32, %c0_i32_0 : i32, i32, i32
  }
  func.func @transform_1(%arg0: i32) -> (i32, i32) {
    %c0_i32 = arith.constant 0 : i32
    %c0_i32_0 = arith.constant 0 : i32
    %c0_i32_1 = arith.constant 0 : i32
    return %c0_i32, %c0_i32_0 : i32, i32
  }
  func.func @transform_2(%arg0: i32) -> (i32, i32) {
    %c0_i32 = arith.constant 0 : i32
    %c0_i32_0 = arith.constant 0 : i32
    %c0_i32_1 = arith.constant 0 : i32
    return %c0_i32, %c0_i32_0 : i32, i32
  }
  func.func @transform_3(%arg0: i32) -> (i32, i32) {
    %c0_i32 = arith.constant 0 : i32
    %c0_i32_0 = arith.constant 0 : i32
    %c0_i32_1 = arith.constant 0 : i32
    return %c0_i32, %c0_i32_0 : i32, i32
  }
  func.func @transform_4(%arg0: i32) -> (i32, i32) {
    %c0_i32 = arith.constant 0 : i32
    %c0_i32_0 = arith.constant 0 : i32
    %c0_i32_1 = arith.constant 0 : i32
    return %c0_i32, %c0_i32_0 : i32, i32
  }
  func.func @transform_5(%arg0: i32) -> (i32, i32) {
    %c0_i32 = arith.constant 0 : i32
    %c0_i32_0 = arith.constant 0 : i32
    %c0_i32_1 = arith.constant 0 : i32
    return %c0_i32, %c0_i32_0 : i32, i32
  }
  func.func @transform_6(%arg0: i32) -> (i32, i32) {
    %c0_i32 = arith.constant 0 : i32
    %c0_i32_0 = arith.constant 0 : i32
    %c0_i32_1 = arith.constant 0 : i32
    return %c0_i32, %c0_i32_0 : i32, i32
  }
  func.func @transform_7(%arg0: i32) -> (i32, i32) {
    %c0_i32 = arith.constant 0 : i32
    %c0_i32_0 = arith.constant 0 : i32
    %c0_i32_1 = arith.constant 0 : i32
    return %c0_i32, %c0_i32_0 : i32, i32
  }
  func.func @transform_8(%arg0: i32) -> (i32, i32) {
    %c0_i32 = arith.constant 0 : i32
    %c0_i32_0 = arith.constant 0 : i32
    %c0_i32_1 = arith.constant 0 : i32
    return %c0_i32, %c0_i32_0 : i32, i32
  }
  func.func @transform_9(%arg0: i32) -> (i32, i32) {
    %c0_i32 = arith.constant 0 : i32
    %c0_i32_0 = arith.constant 0 : i32
    %c0_i32_1 = arith.constant 0 : i32
    return %c0_i32, %c0_i32_0 : i32, i32
  }
  func.func @transform_10(%arg0: i32) -> (i32, i32) {
    %c0_i32 = arith.constant 0 : i32
    %c0_i32_0 = arith.constant 0 : i32
    %c0_i32_1 = arith.constant 0 : i32
    return %c0_i32, %c0_i32_0 : i32, i32
  }
  func.func @transform_11(%arg0: i32) -> (i32, i32) {
    %c0_i32 = arith.constant 0 : i32
    %c0_i32_0 = arith.constant 0 : i32
    %c0_i32_1 = arith.constant 0 : i32
    return %c0_i32, %c0_i32_0 : i32, i32
  }
  func.func @transform_12(%arg0: i32) -> (i32, i32) {
    %c0_i32 = arith.constant 0 : i32
    %c0_i32_0 = arith.constant 0 : i32
    %c0_i32_1 = arith.constant 0 : i32
    return %c0_i32, %c0_i32_0 : i32, i32
  }
  func.func @transform_13(%arg0: i32) -> (i32, i32) {
    %c0_i32 = arith.constant 0 : i32
    %c0_i32_0 = arith.constant 0 : i32
    %c0_i32_1 = arith.constant 0 : i32
    return %c0_i32, %c0_i32_0 : i32, i32
  }
  func.func @transform_14(%arg0: i32) -> (i32, i32) {
    %c0_i32 = arith.constant 0 : i32
    %c0_i32_0 = arith.constant 0 : i32
    %c0_i32_1 = arith.constant 0 : i32
    return %c0_i32, %c0_i32_0 : i32, i32
  }
  func.func @transform_15(%arg0: i32) -> (i32, i32) {
    %c0_i32 = arith.constant 0 : i32
    %c0_i32_0 = arith.constant 0 : i32
    %c0_i32_1 = arith.constant 0 : i32
    return %c0_i32, %c0_i32_0 : i32, i32
  }
  func.func @transform_16(%arg0: i32) -> (i32, i32) {
    %c0_i32 = arith.constant 0 : i32
    %c0_i32_0 = arith.constant 0 : i32
    %c0_i32_1 = arith.constant 0 : i32
    return %c0_i32, %c0_i32_0 : i32, i32
  }
  func.func @transform_17(%arg0: i32) -> (i32, i32) {
    %c0_i32 = arith.constant 0 : i32
    %c0_i32_0 = arith.constant 0 : i32
    %c0_i32_1 = arith.constant 0 : i32
    return %c0_i32, %c0_i32_0 : i32, i32
  }
  func.func @transform_18(%arg0: i32) -> (i32, i32) {
    %c0_i32 = arith.constant 0 : i32
    %c0_i32_0 = arith.constant 0 : i32
    %c0_i32_1 = arith.constant 0 : i32
    return %c0_i32, %c0_i32_0 : i32, i32
  }
  func.func @transform_19(%arg0: i32) -> (i32, i32) {
    %c0_i32 = arith.constant 0 : i32
    %c0_i32_0 = arith.constant 0 : i32
    %c0_i32_1 = arith.constant 0 : i32
    return %c0_i32, %c0_i32_0 : i32, i32
  }
  func.func @transform_20(%arg0: i32) -> (i32, i32) {
    %c0_i32 = arith.constant 0 : i32
    %c0_i32_0 = arith.constant 0 : i32
    %c0_i32_1 = arith.constant 0 : i32
    return %c0_i32, %c0_i32_0 : i32, i32
  }
  func.func @transform_21(%arg0: i32) -> (i32, i32) {
    %c0_i32 = arith.constant 0 : i32
    %c0_i32_0 = arith.constant 0 : i32
    %c0_i32_1 = arith.constant 0 : i32
    return %c0_i32, %c0_i32_0 : i32, i32
  }
  func.func @transform_22(%arg0: i32) -> (i32, i32) {
    %c0_i32 = arith.constant 0 : i32
    %c0_i32_0 = arith.constant 0 : i32
    %c0_i32_1 = arith.constant 0 : i32
    return %c0_i32, %c0_i32_0 : i32, i32
  }
  func.func @transform_23(%arg0: i32) -> (i32, i32) {
    %c0_i32 = arith.constant 0 : i32
    %c0_i32_0 = arith.constant 0 : i32
    %c0_i32_1 = arith.constant 0 : i32
    return %c0_i32, %c0_i32_0 : i32, i32
  }
  func.func @transform_24(%arg0: i32) -> (i32, i32) {
    %c0_i32 = arith.constant 0 : i32
    %c0_i32_0 = arith.constant 0 : i32
    %c0_i32_1 = arith.constant 0 : i32
    return %c0_i32, %c0_i32_0 : i32, i32
  }
  func.func @transform_25(%arg0: i32) -> (i32, i32, i32) {
    %c0_i32 = arith.constant 0 : i32
    %c0_i32_0 = arith.constant 0 : i32
    %c0_i32_1 = arith.constant 0 : i32
    return %arg0, %c0_i32, %c0_i32_0 : i32, i32, i32
  }
}

</mosaic_0001>

<bundles_post_ra>
// kernel: hyper_mlp_forward.1
= control target key start
LH: loop header
LB: loop body
LE: loop exit
PB: predicated region body
PF: predicated region fallthrough
CT: control target
= control target key end

     0   :  { %s2367_s29 = smov 0   ;;  %s2936_s0 = inlined_call_operand.vmem [shape: f32[2,1,192], index: 0, kind: input, shape index: {}]   ;;  %s2937_s1 = inlined_call_operand.vmem [shape: f32[2,256], index: 1, kind: input, shape index: {}]   ;;  %s2938_s2 = inlined_call_operand.vmem [shape: f32[192,64], index: 2, kind: input, shape index: {}]   ;;  %s2939_s3 = inlined_call_operand.vmem [shape: f32[1,64], index: 3, kind: input, shape index: {}]   ;;  %s2940_s4 = inlined_call_operand.vmem [shape: f32[64,352], index: 4, kind: input, shape index: {}]   ;;  %s2941_s5 = inlined_call_operand.vmem [shape: f32[1,352], index: 5, kind: input, shape index: {}]   ;;  %s2942_s6 = inlined_call_operand.vmem [shape: f32[11,32], index: 6, kind: input, shape index: {}]   ;;  %s2943_s7 = inlined_call_operand.vmem [shape: f32[32,2], index: 7, kind: input, shape index: {}]   ;;  %s2944_s8 = inlined_call_operand.vmem [shape: f32[32,1], index: 8, kind: input, shape index: {}]   ;;  %s2945_s9 = inlined_call_operand.vmem [shape: f32[1,32], index: 9, kind: input, shape index: {}]   ;;  %s2946_s10 = inlined_call_operand.vmem [shape: f32[1,32], index: 10, kind: input, shape index: {}]   ;;  %s2947_s11 = inlined_call_operand.vmem [shape: f32[32,2], index: 11, kind: input, shape index: {}]   ;;  %s2948_s12 = inlined_call_operand.vmem [shape: f32[1,2], index: 12, kind: input, shape index: {}]   ;;  %s2949_s13 = inlined_call_operand.vmem [shape: f32[32,32], index: 13, kind: input, shape index: {}]   ;;  %s2950_s14 = inlined_call_operand.vmem [shape: f32[32,1], index: 14, kind: input, shape index: {}]   ;;  %s2951_s15 = inlined_call_operand.vmem [shape: f32[1,32], index: 15, kind: input, shape index: {}]   ;;  %s2952_s16 = inlined_call_operand.vmem [shape: f32[1,32], index: 16, kind: input, shape index: {}]   ;;  %s2953_s17 = inlined_call_operand.vmem [shape: f32[32,32], index: 17, kind: input, shape index: {}]   ;;  %s2954_s18 = inlined_call_operand.vmem [shape: f32[1,32], index: 18, kind: input, shape index: {}]   ;;  %s2955_s19 = inlined_call_operand.vmem [shape: f32[3,32], index: 19, kind: input, shape index: {}]   ;;  %s2956_s20 = inlined_call_operand.vmem [shape: f32[3,1], index: 20, kind: input, shape index: {}]   ;;  %s2957_s21 = inlined_call_operand.vmem [shape: f32[1,32], index: 21, kind: input, shape index: {}]   ;;  %s2958_s22 = inlined_call_operand.vmem [shape: f32[1,32], index: 22, kind: input, shape index: {}]   ;;  %s2959_s23 = inlined_call_operand.vmem [shape: f32[32,32], index: 23, kind: input, shape index: {}]   ;;  %s2960_s24 = inlined_call_operand.vmem [shape: f32[1,32], index: 24, kind: input, shape index: {}]   ;;  %s2961_s25 = inlined_call_operand.vmem [shape: f32[2,3,256], index: 25, kind: output, shape index: {}]  }
   0x1   :  { %2968 = sst [smem:[#allocation2_spill]] %s2936_s0 }
   0x2   :  { %2969 = sst [smem:[#allocation3_spill]] %s2937_s1 }
   0x3   :  { %2970 = sst [smem:[#allocation4_spill]] %s2938_s2 }
   0x4   :  { %2971 = sst [smem:[#allocation5_spill]] %s2939_s3 }
   0x5   :  { %2972 = sst [smem:[#allocation6_spill]] %s2940_s4 }
   0x6   :  { %2973 = sst [smem:[#allocation7_spill]] %s2941_s5 }
   0x7   :  { %2974 = sst [smem:[#allocation8_spill]] %s2942_s6 }
   0x8   :  { %2975 = sst [smem:[#allocation9_spill]] %s2943_s7 }
   0x9   :  { %2976 = sst [smem:[#allocation10_spill]] %s2944_s8 }
   0xa   :  { %2977 = sst [smem:[#allocation11_spill]] %s2945_s9 }
   0xb LB: > { %s2049_s2 = sadd.s32 4294967295, %s2228_s29   ;;  %p2053_p0 = scmp.ge.s32.totalorder %s2228_s29, 1  ;;  %s2228_s29 = sphi %s2367_s29, %s35_s29  }
   0xc   : > { %p686_p1 = scmp.lt.s32.totalorder %s2228_s29, 3 }
   0xe   : > { %p687_p2 = pnand %p2053_p0, %p686_p1 }
   0xf   : > { %s2978_s7 = sld [smem:[#allocation4_spill]] (!%p687_p2)  ;;  %p753_p3 = scmp.lt.s32.totalorder (!%p687_p2), %s2049_s2, 1 }
  0x10   : > { %690 = sbr.rel (%p687_p2) target bundleno = 1855 (0x73f), region = 120  ;;  %s2979_s0 = sld [smem:[#allocation2_spill]] (!%p687_p2) }
  0x11   : > { %s2980_s8 = sld [smem:[#allocation6_spill]] (!%p687_p2)  ;;  %s2232_s28 = smov (!%p687_p2), 32  }
  0x12   : > { %s2981_s5 = sld [smem:[#allocation5_spill]] (!%p687_p2)  ;;  %s2967_s9 = smov (!%p687_p2), 96  }
  0x13   : > { %s2983_s30 = sld [smem:[#allocation8_spill]] (!%p687_p2) }
  0x15   : > { %v778_v0 = vld [vmem:[%s2978_s7 + $0x78] sm:$0xff]  ;;  %v789_v1 = vlaneseq  ;;  %v2230_v2 = vmov 0.0   ;;  %v777_v3 = vld [vmem:[%s2978_s7 + $0x70] sm:$0xff]  ;;  %s2990_s2 = smov (!%p753_p3, %s2049_s2), 1  ;;  %v776_v5 = vld [vmem:[%s2978_s7 + $0x68] sm:$0xff]  ;;  %vm798_vm0 = vcmask 523264  }
  0x16   : > { %801 = vmatprep.subr.mxu0 %v2230_v2  ;;  %980 = vmatprep.mubr.f32.mxu1 %v2230_v2  ;;  %s2054_s27 = sshll.u32 %s2990_s2, 1  ;;  %v775_v6 = vld [vmem:[%s2978_s7 + $0x60] sm:$0xff]  ;;  %v774_v8 = vld [vmem:[%s2978_s7 + $0x58] sm:$0xff]  ;;  %v773_v12 = vld [vmem:[%s2978_s7 + $0x50] sm:$0xff]  ;;  %vm2231_vm1 = vmmov 0   ;;  %vm1085_vm2 = vcmask 1040384  }
  0x17   : > { %802 = vmatpush1.msra.mxu0 %v778_v0  ;;  %v2385_v4 = vshrl.u32 %v789_v1, 7  ;;  %s756_s6 = scalar_lea.vmem %s2979_s0, %s2054_s27  ;;  %v894_v10 = vld [vmem:[%s2980_s8 + $0xb0] sm:$0xff]  ;;  %v893_v11 = vld [vmem:[%s2980_s8 + $0xa8] sm:$0xff]  ;;  %v891_v14 = vld [vmem:[%s2980_s8 + $0x98] sm:$0xff]  ;;  %s2982_s27 = sld [smem:[#allocation7_spill]]  ;;  %vm1087_vm3 = vcmask 1041408  }
  0x18   : > { %803 = vmatprep.subr.mxu0 %v2230_v2  ;;  %v2406_v9 = vld [vmem:[%s756_s6] sm:$0x3]  ;;  %932 = vmatprep.subr.mxu1 %v894_v10  ;;  %v890_v15 = vld [vmem:[%s2980_s8 + $0x90] sm:$0xff]  ;;  %v772_v16 = vld [vmem:[%s2978_s7 + $0x48] sm:$0xff]  ;;  %vm1089_vm4 = vcmask 1042432   ;;  %vm1091_vm5 = vcmask 257024  }
  0x19   : > { %804 = vmatpush1.msra.mxu0 %v777_v3  ;;  %v2400_v7 = vsub.s32 1, %v2385_v4  ;;  %933 = vmatpush1.msra.mxu1 %v893_v11  ;;  %v888_v17 = vld [vmem:[%s2980_s8 + $0x80] sm:$0xff]  ;;  %v887_v18 = vld [vmem:[%s2980_s8 + $0x78] sm:$0xff]  ;;  %v885_v20 = vld [vmem:[%s2980_s8 + $0x68] sm:$0xff]  ;;  %v2516_v40 = vsub.s32 0, %v2385_v4  ;;  %s2984_s0 = smov 96  }
  0x1a   : > { %805 = vmatprep.subr.mxu0 %v2230_v2  ;;  %934 = vmatprep.subr.mxu1 %v891_v14  ;;  %v771_v19 = vld [vmem:[%s2978_s7 + $0x40] sm:$0xff]  ;;  %v770_v22 = vld [vmem:[%s2978_s7 + $0x38] sm:$0xff]  ;;  %v882_v23 = vld [vmem:[%s2980_s8 + $0x50] sm:$0xff]  ;;  %vm1517_vm6 = vcmask 256000   ;;  %vm1133_vm7 = vcmask 261120   ;;  %vm1210_vm8 = vcmask 1043456  }
  0x1b   : > { %806 = vmatpush1.msra.mxu0 %v776_v5  ;;  %v796_v13 = vrot.slane %v2406_v9, %v2400_v7  ;;  %935 = vmatpush1.msra.mxu1 %v890_v15  ;;  %v884_v21 = vld [vmem:[%s2980_s8 + $0x60] sm:$0xff]  ;;  %v881_v24 = vld [vmem:[%s2980_s8 + $0x48] sm:$0xff]  ;;  %v769_v25 = vld [vmem:[%s2978_s7 + $0x30] sm:$0xff]  ;;  %v792_v43 = vrot.slane %v2406_v9, %v2516_v40  ;;  %s2986_s6 = sld [smem:[#allocation9_spill]]  ;;  %vm1224_vm9 = vcmask 15360   ;;  %s2079_s4 = sshll.u32 %s2990_s2, 3 }
  0x1c   : > { %807 = vmatprep.subr.mxu0 %v2230_v2  ;;  %936 = vmatprep.subr.mxu1 %v888_v17  ;;  %v879_v26 = vld [vmem:[%s2980_s8 + $0x38] sm:$0xff]  ;;  %v878_v27 = vld [vmem:[%s2980_s8 + $0x30] sm:$0xff]  ;;  %v768_v28 = vld [vmem:[%s2978_s7 + $0x28] sm:$0xff] }
  0x1d   : > { %808 = vmatpush1.msra.mxu0 %v775_v6  ;;  %2057 = vmatprep.mubr.msk.f32.mxu0 %vm798_vm0, %v796_v13  ;;  %v767_v29 = vld [vmem:[%s2978_s7 + $0x20] sm:$0xff]  ;;  %v766_v30 = vld [vmem:[%s2978_s7 + $0x18] sm:$0xff]  ;;  %v765_v31 = vld [vmem:[%s2978_s7 + $0x10] sm:$0xff] }
  0x1e   : > { %809 = vmatprep.subr.mxu0 %v2230_v2  ;;  %937 = vmatpush1.msra.mxu1 %v887_v18  ;;  %v764_v32 = vld [vmem:[%s2978_s7 + $0x8] sm:$0xff]  ;;  %v763_v33 = vld [vmem:[%s2978_s7] sm:$0xff]  ;;  %v786_v34 = vld [vmem:[%s2978_s7 + $0xb8] sm:$0xff] }
  0x1f   : > { %810 = vmatpush1.msra.mxu0 %v774_v8  ;;  %938 = vmatprep.subr.mxu1 %v885_v20  ;;  %v785_v35 = vld [vmem:[%s2978_s7 + $0xb0] sm:$0xff]  ;;  %v784_v36 = vld [vmem:[%s2978_s7 + $0xa8] sm:$0xff]  ;;  %v783_v37 = vld [vmem:[%s2978_s7 + $0xa0] sm:$0xff] }
  0x20   : > { %811 = vmatprep.subr.mxu0 %v2230_v2  ;;  %939 = vmatpush1.msra.mxu1 %v884_v21  ;;  %v782_v38 = vld [vmem:[%s2978_s7 + $0x98] sm:$0xff]  ;;  %v781_v39 = vld [vmem:[%s2978_s7 + $0x90] sm:$0xff]  ;;  %v780_v41 = vld [vmem:[%s2978_s7 + $0x88] sm:$0xff] }
  0x21   : > { %812 = vmatpush1.msra.mxu0 %v773_v12  ;;  %940 = vmatprep.subr.mxu1 %v882_v23  ;;  %v779_v42 = vld [vmem:[%s2978_s7 + $0x80] sm:$0xff]  ;;  %v875_v45 = vld [vmem:[%s2980_s8 + $0x18] sm:$0xff]  ;;  %v873_v46 = vld [vmem:[%s2980_s8 + $0x8] sm:$0xff] }
  0x22   : > { %813 = vmatprep.subr.mxu0 %v2230_v2  ;;  %941 = vmatpush1.msra.mxu1 %v881_v24  ;;  %v876_v44 = vld [vmem:[%s2980_s8 + $0x20] sm:$0xff]  ;;  %v895_v53 = vld [vmem:[%s2980_s8 + $0xb8] sm:$0xff]  ;;  %v889_v55 = vld [vmem:[%s2980_s8 + $0x88] sm:$0xff] }
  0x23   : > { %814 = vmatpush1.msra.mxu0 %v772_v16  ;;  %942 = vmatprep.subr.mxu1 %v879_v26  ;;  %v872_v47 = vld [vmem:[%s2980_s8] sm:$0xff]  ;;  %v886_v56 = vld [vmem:[%s2980_s8 + $0x70] sm:$0xff]  ;;  %v883_v57 = vld [vmem:[%s2980_s8 + $0x58] sm:$0xff] }
  0x24   : > { %815 = vmatprep.subr.mxu0 %v2230_v2  ;;  %943 = vmatpush1.msra.mxu1 %v878_v27  ;;  %v787_v48 = vld [vmem:[%s2981_s5] sm:$0x1]  ;;  %v877_v59 = vld [vmem:[%s2980_s8 + $0x28] sm:$0xff]  ;;  %v874_v60 = vld [vmem:[%s2980_s8 + $0x10] sm:$0xff]  ;;  %s2234_s5 = smov 64  }
  0x25   : > { %816 = vmatpush1.msra.mxu0 %v771_v19  ;;  %944 = vmatprep.subr.mxu1 %v876_v44  ;;  %v892_v54 = vld [vmem:[%s2980_s8 + $0xa0] sm:$0xff] }
  0x26   : > { %817 = vmatprep.subr.mxu0 %v2230_v2  ;;  %945 = vmatpush1.msra.mxu1 %v875_v45  ;;  %v880_v58 = vld [vmem:[%s2980_s8 + $0x40] sm:$0xff] }
  0x27   : > { %818 = vmatpush1.msra.mxu0 %v770_v22  ;;  %946 = vmatprep.subr.mxu1 %v873_v46  ;;  %v2589_v61 = vld [vmem:[%s2982_s27] sm:$0x7]  ;;  %v1071_v11 = vld [vmem:[%s2983_s30 + $0x3] sm:$0x1]  ;;  %v1283_v24 = vld [vmem:[%s2983_s30 + $0x5] sm:$0x1] }
  0x28   : > { %819 = vmatprep.subr.mxu0 %v2230_v2  ;;  %947 = vmatpush1.msra.mxu1 %v872_v47  ;;  %v901_v62 = vrot.slane %v2589_v61, %v2516_v40  ;;  %v905_v1 = vrot.slane %v2589_v61, %v2400_v7  ;;  %v1060_v9 = vld [vmem:[%s2983_s30 + $0x1] sm:$0x1]  ;;  %v1066_v14 = vld [vmem:[%s2983_s30 + $0x2] sm:$0x1]  ;;  %v1058_v15 = vld [vmem:[%s2983_s30] sm:$0x1] }
  0x29   : > { %820 = vmatpush1.msra.mxu0 %v769_v25  ;;  %2104 = vmatprep.subr.mxu1 %v2230_v2  ;;  %v1289_v27 = vld [vmem:[%s2983_s30 + $0x6] sm:$0x1]  ;;  %s2987_s27 = sld [smem:[#allocation10_spill]] }
  0x2a   : > { %821 = vmatprep.subr.mxu0 %v2230_v2 }
  0x2b   : > { %822 = vmatpush1.msra.mxu0 %v768_v28 }
  0x2c   : > { %823 = vmatprep.subr.mxu0 %v2230_v2 }
  0x2d   : > { %824 = vmatpush1.msra.mxu0 %v767_v29 }
  0x2e   : > { %825 = vmatprep.subr.mxu0 %v2230_v2 }
  0x2f   : > { %826 = vmatpush1.msra.mxu0 %v766_v30 }
  0x30   : > { %827 = vmatprep.subr.mxu0 %v2230_v2 }
  0x31   : > { %828 = vmatpush1.msra.mxu0 %v765_v31 }
  0x32   : > { %829 = vmatprep.subr.mxu0 %v2230_v2 }
  0x33   : > { %830 = vmatpush1.msra.mxu0 %v764_v32 }
  0x34   : > { %831 = vmatprep.subr.mxu0 %v2230_v2 }
  0x35   : > { %832 = vmatpush1.msra.mxu0 %v763_v33  ;;  %v1281_v33 = vld [vmem:[%s2983_s30 + $0x4] sm:$0x1] }
  0x36   : > { %849 = vmatprep.subr.mxu0 %v2230_v2 }
  0x37   : > { %850 = vmatpush2.msra.mxu0 %v786_v34  ;;  %v1294_v34 = vld [vmem:[%s2983_s30 + $0x7] sm:$0x1] }
  0x38   : > { %851 = vmatprep.subr.mxu0 %v2230_v2 }
  0x39   : > { %852 = vmatpush2.msra.mxu0 %v785_v35 }
  0x3a   : > { %853 = vmatprep.subr.mxu0 %v2230_v2 }
  0x3b   : > { %854 = vmatpush2.msra.mxu0 %v784_v36 }
  0x3c   : > { %855 = vmatprep.subr.mxu0 %v2230_v2 }
  0x3d   : > { %856 = vmatpush2.msra.mxu0 %v783_v37 }
  0x3e   : > { %857 = vmatprep.subr.mxu0 %v2230_v2 }
  0x3f   : > { %858 = vmatpush2.msra.mxu0 %v782_v38 }
  0x40   : > { %859 = vmatprep.subr.mxu0 %v2230_v2 }
  0x41   : > { %860 = vmatpush2.msra.mxu0 %v781_v39 }
  0x42   : > { %861 = vmatprep.subr.mxu0 %v2230_v2 }
  0x43   : > { %862 = vmatpush2.msra.mxu0 %v780_v41 }
  0x44   : > { %863 = vmatprep.subr.mxu0 %v2230_v2 }
  0x45   : > { %864 = vmatpush2.msra.mxu0 %v779_v42 }
  0x46   : > { %866 = vmatmul.mubr.f32.vlgmr.msra.gmra.mxu0 %v792_v43  ;;  %2145 = vmatprep.subr.mxu0 %v2230_v2 }
  0x47   : > { %2153 = vmatprep.mubr.msk.f32.mxu0 %vm2231_vm1, %v2230_v2 }
 0x106   : > { %v867_v49 = vpop.f32.mrf.mxu0 }
 0x107   : > { %v868_v50 = vadd.f32 %v867_v49, %v787_v48 }
 0x108   : > { %v869_v51 = vpop.f32.mrf.mxu0 }
 0x109   : > { %v871_v52 = vmax.f32 %v868_v50, 0.0 }
 0x10b   : > { %2058 = vmatmul.mubr.msk.f32.vlgmr.msra.gmra.mxu1 %vm798_vm0, %v871_v52 }
 0x10c   : > { %2105 = vmatpush3.msra.mxu1 %v895_v53  ;;  %2120 = vmatprep.mubr.msk.f32.mxu1 %vm2231_vm1, %v2230_v2 }
 0x10d   : > { %2106 = vmatprep.subr.mxu1 %v2230_v2 }
 0x10e   : > { %2107 = vmatpush3.msra.mxu1 %v892_v54 }
 0x10f   : > { %2108 = vmatprep.subr.mxu1 %v2230_v2 }
 0x110   : > { %2109 = vmatpush3.msra.mxu1 %v889_v55 }
 0x111   : > { %2110 = vmatprep.subr.mxu1 %v2230_v2 }
 0x112   : > { %2111 = vmatpush3.msra.mxu1 %v886_v56  ;;  %v908_v56 = vsub.s32 2, %v2385_v4 }
 0x113   : > { %2112 = vmatprep.subr.mxu1 %v2230_v2 }
 0x114   : > { %2113 = vmatpush3.msra.mxu1 %v883_v57  ;;  %v909_v57 = vrot.slane %v2589_v61, %v908_v56  ;;  %v1123_v61 = vld [vmem:[%s2947_s11 + $0x8] sm:$0xff] }
 0x115   : > { %2114 = vmatprep.subr.mxu1 %v2230_v2 }
 0x116   : > { %2115 = vmatpush3.msra.mxu1 %v880_v58 }
 0x117   : > { %2116 = vmatprep.subr.mxu1 %v2230_v2 }
 0x118   : > { %2117 = vmatpush3.msra.mxu1 %v877_v59  ;;  %v1125_v59 = vld [vmem:[%s2947_s11 + $0x18] sm:$0xff] }
 0x119   : > { %2118 = vmatprep.subr.mxu1 %v2230_v2 }
 0x11a   : > { %2119 = vmatpush3.msra.mxu1 %v874_v60  ;;  %v1124_v60 = vld [vmem:[%s2947_s11 + $0x10] sm:$0xff] }
 0x11b   : > { %2121 = vmatmul.mubr.msk.f32.vlgmr.msra.gmra.mxu1 %vm798_vm0, %v871_v52  ;;  %2123 = vmatprep.subr.mxu1 %v2230_v2 }
 0x11c   : > { %2131 = vmatprep.mubr.msk.f32.mxu1 %vm2231_vm1, %v2230_v2  ;;  %2124 = vmatpush3.msra.mxu1 %v1125_v59 }
 0x11d   : > { %2125 = vmatprep.subr.mxu1 %v2230_v2 }
 0x11e   : > { %2126 = vmatpush3.msra.mxu1 %v1124_v60 }
 0x11f   : > { %2127 = vmatprep.subr.mxu1 %v2230_v2 }
 0x120   : > { %2128 = vmatpush3.msra.mxu1 %v1123_v61  ;;  %v1212_v61 = vld [vmem:[%s2986_s6] sm:$0xff] }
 0x121   : > { %2129 = vmatprep.subr.mxu1 %v2230_v2 }
 0x1cb   : > { %v982_v63 = vpop.f32.mrf.mxu1 }
 0x1cc   : > { %v983_v0 = vadd.f32 %v982_v63, %v901_v62  ;;  %v1122_v62 = vld [vmem:[%s2947_s11] sm:$0xff] }
 0x1cd   : > { %v984_v3 = vpop.f32.mrf.mxu1  ;;  %2130 = vmatpush3.msra.mxu1 %v1122_v62 }
 0x1ce   : > { %1072 = vrot.lane.b32.xlu1 %v983_v0, %s2232_s28  ;;  %1062 = vrot.lane.b32.xlu0 %v983_v0, %s2967_s9  ;;  %v985_v5 = vadd.f32 %v984_v3, %v905_v1  ;;  %v1059_v20 = vadd.f32 %v1058_v15, %v983_v0 }
 0x1cf   : > { %2134 = vmatprep.subr.mxu1 %v2230_v2 }
 0x1d0   : > { %v1282_v38 = vadd.f32 %v1281_v33, %v985_v5 }
 0x1d2   : > { %1067 = vrot.lane.b32.xlu0 %v983_v0, %s2234_s5 }
 0x1d6   : > { %1285 = vrot.lane.b32.xlu0 %v985_v5, %s2967_s9  ;;  %s2988_s9 = sld [smem:[#allocation3_spill]] }
 0x1da   : > { %1290 = vrot.lane.b32.xlu0 %v985_v5, %s2234_s5 }
 0x1db   : > { %v1053_v6 = vpop.f32.mrf.mxu1 }
 0x1dc   : > { %v1054_v58 = vadd.f32 %v1053_v6, %v909_v57 }
 0x1dd   : > { %v2122_v8 = vpop.f32.mrf.mxu1 }
 0x1de   : > { %1295 = vrot.lane.b32.xlu0 %v985_v5, %s2232_s28  ;;  %v1504_v5 = vld [vmem:[%s2983_s30 + $0xa] sm:$0x1] }
 0x240   : > { %v1063_v10 = vpop.permute.xlu0 %1062  ;;  %v1073_v12 = vpop.permute.xlu1 %1072 }
 0x241   : > { %v1065_v13 = vadd.f32 %v1063_v10, %v1060_v9  ;;  %v1075_v16 = vadd.f32 %v1073_v12, %v1071_v11  ;;  %v1498_v9 = vld [vmem:[%s2983_s30 + $0x9] sm:$0x1]  ;;  %v1496_v11 = vld [vmem:[%s2983_s30 + $0x8] sm:$0x1] }
 0x243   : > { %v1077_v17 = vrot.slane %v1065_v13, 7  ;;  %v1083_v22 = vrot.slane %v1075_v16, 5  ;;  %v1497_v16 = vadd.f32 %v1496_v11, %v1054_v58 }
 0x244   : > { %v1068_v18 = vpop.permute.xlu0 %1067 }
 0x245   : > { %v1070_v19 = vadd.f32 %v1068_v18, %v1066_v14  ;;  %v1086_v23 = vsel %vm1085_vm2, %v1059_v20, %v1077_v17 }
 0x247   : > { %v1080_v21 = vrot.slane %v1070_v19, 6 }
 0x248   : > { %v1286_v25 = vpop.permute.xlu0 %1285 }
 0x249   : > { %v1088_v26 = vsel %vm1087_vm3, %v1086_v23, %v1080_v21  ;;  %v1288_v29 = vadd.f32 %v1286_v25, %v1283_v24 }
 0x24a   : > { %v1090_v28 = vsel %vm1089_vm4, %v1088_v26, %v1083_v22  ;;  %v2061_v22 = vld [vmem:[%s2946_s10] ss:$0 sm:$0xff] }
 0x24b   : > { %v1092_v30 = vsel %vm1091_vm5, %v1090_v28, 0.0  ;;  %v1300_v35 = vrot.slane %v1288_v29, 7  ;;  %v1341_v29 = vld [vmem:[%s2953_s17 + $0x8] sm:$0xff] }
 0x24c   : > { %v1291_v31 = vpop.permute.xlu0 %1290  ;;  %1093 = vadd.xlane.f32.xlu1 %v1092_v30 }
 0x24d   : > { %v1293_v32 = vadd.f32 %v1291_v31, %v1289_v27  ;;  %v1308_v41 = vsel %vm1085_vm2, %v1282_v38, %v1300_v35  ;;  %v1343_v27 = vld [vmem:[%s2953_s17 + $0x18] sm:$0xff]  ;;  %v1340_v31 = vld [vmem:[%s2953_s17] sm:$0xff] }
 0x24f   : > { %v1303_v36 = vrot.slane %v1293_v32, 6  ;;  %v2064_v32 = vld [vmem:[%s2951_s15] ss:$0 sm:$0xff] }
 0x250   : > { %v1296_v37 = vpop.permute.xlu0 %1295 }
 0x251   : > { %v1298_v39 = vadd.f32 %v1296_v37, %v1294_v34  ;;  %v1309_v43 = vsel %vm1087_vm3, %v1308_v41, %v1303_v36  ;;  %v2065_v34 = vld [vmem:[%s2952_s16] ss:$0 sm:$0xff]  ;;  %v2235_v37 = vmov 0  }
 0x252   : > { %2171 = vset.pattern.permute.xlu1 %v2235_v37 }
 0x253   : > { %v1306_v42 = vrot.slane %v1298_v39, 5 }
 0x255   : > { %v1310_v44 = vsel %vm1089_vm4, %v1309_v43, %v1306_v42 }
 0x256   : > { %v1311_v45 = vsel %vm1091_vm5, %v1310_v44, 0.0 }
 0x257   : > { %1312 = vadd.xlane.f32.xlu1 %v1311_v45  ;;  %v1549_v45 = vld [vmem:[%s2959_s23 + $0x10] sm:$0xff] }
 0x2d5   : > { %v1094_v46 = vpop.xlane.xlu1 %1093 }
 0x2d6   : > { %v1096_v47 = vmul.f32 0.03125, %v1094_v46  ;;  %v1548_v46 = vld [vmem:[%s2959_s23 + $0x8] sm:$0xff] }
 0x2d8   : > { %v1097_v48 = vsub.f32 %v1090_v28, %v1096_v47  ;;  %v1342_v28 = vld [vmem:[%s2953_s17 + $0x10] sm:$0xff]  ;;  %v1547_v47 = vld [vmem:[%s2959_s23] sm:$0xff] }
 0x2da   : > { %v1098_v49 = vmul.f32 %v1097_v48, %v1097_v48 }
 0x2dc   : > { %v1099_v50 = vsel %vm1091_vm5, %v1098_v49, 0.0 }
 0x2dd   : > { %1100 = vadd.xlane.f32.xlu0 %v1099_v50 }
 0x2e0   : > { %v1313_v51 = vpop.xlane.xlu1 %1312 }
 0x2e1   : > { %v1314_v52 = vmul.f32 0.03125, %v1313_v51 }
 0x2e3   : > { %v2632_v53 = vsub.f32 %v1310_v44, %v1314_v52  ;;  %v1550_v44 = vld [vmem:[%s2959_s23 + $0x18] sm:$0xff] }
 0x2e4   : > { %2146 = vmatpush3.msra.mxu0 %v1550_v44  ;;  %v2069_v44 = vld [vmem:[%s2958_s22] ss:$0 sm:$0xff] }
 0x2e5   : > { %v1316_v54 = vmul.f32 %v2632_v53, %v2632_v53  ;;  %2147 = vmatprep.subr.mxu0 %v2230_v2 }
 0x2e6   : > { %2148 = vmatpush3.msra.mxu0 %v1549_v45 }
 0x2e7   : > { %v1317_v55 = vsel %vm1091_vm5, %v1316_v54, 0.0  ;;  %2149 = vmatprep.subr.mxu0 %v2230_v2  ;;  %v1214_v54 = vld [vmem:[%s2986_s6 + $0x10] sm:$0xff] }
 0x2e8   : > { %1318 = vadd.xlane.f32.xlu1 %v1317_v55  ;;  %2150 = vmatpush3.msra.mxu0 %v1548_v46  ;;  %v1213_v55 = vld [vmem:[%s2986_s6 + $0x8] sm:$0xff] }
 0x2e9   : > { %2151 = vmatprep.subr.mxu0 %v2230_v2 }
 0x2ea   : > { %2152 = vmatpush3.msra.mxu0 %v1547_v47 }
 0x2f3   : > { %1505 = vrot.lane.b32.xlu0 %v1054_v58, %s2234_s5  ;;  %s2985_s5 = sld [smem:[#allocation11_spill]] }
 0x2f9   : > { %1500 = vrot.lane.b32.xlu1 %v1054_v58, %s2984_s0  ;;  %v2060_v18 = vld [vmem:[%s2985_s5] ss:$0 sm:$0xff] }
 0x366   : > { %v1101_v63 = vpop.xlane.xlu0 %1100 }
 0x367   : > { %v1102_v0 = vmul.f32 0.03125, %v1101_v63 }
 0x369   : > { %v1103_v1 = vadd.f32 1e-05, %v1102_v0  ;;  %v2066_v0 = vld [vmem:[%s2954_s18] ss:$0 sm:$0xff] }
 0x36a   : > { %v1506_v6 = vpop.permute.xlu0 %1505 }
 0x36b   : > { %2180 = vrsqrt.f32 %v1103_v1  ;;  %v1508_v12 = vadd.f32 %v1506_v6, %v1504_v5 }
 0x36d   : > { %v1513_v20 = vrot.slane %v1508_v12, 6 }
 0x371   : > { %v1319_v3 = vpop.xlane.xlu1 %1318 }
 0x372   : > { %v1320_v8 = vmul.f32 0.03125, %v1319_v3 }
 0x374   : > { %v1321_v10 = vadd.f32 1e-05, %v1320_v8 }
 0x375   : > { %v1501_v13 = vpop.permute.xlu1 %1500 }
 0x376   : > { %2182 = vrsqrt.f32 %v1321_v10  ;;  %v1503_v14 = vadd.f32 %v1501_v13, %v1498_v9 }
 0x378   : > { %v2181_v15 = vpop.eup %2180  ;;  %v1510_v17 = vrot.slane %v1503_v14, 7  ;;  %v1429_v14 = vld [vmem:[%s2949_s13 + $0x8] sm:$0xff] }
 0x379   : > { %v1105_v19 = vmul.f32 %v2181_v15, %v1097_v48  ;;  %v2062_v48 = vld [vmem:[%s2948_s12] ss:$0 sm:$0xff]  ;;  %v1431_v15 = vld [vmem:[%s2949_s13 + $0x18] sm:$0xff] }
 0x37a   : > { %v1515_v21 = vsel %vm1085_vm2, %v1497_v16, %v1510_v17 }
 0x37b   : > { %v1516_v23 = vsel %vm1087_vm3, %v1515_v21, %v1513_v20  ;;  %v1113_v24 = vmul.f32 %v2060_v18, %v1105_v19 }
 0x37c   : > { %v1518_v25 = vsel %vm1517_vm6, %v1516_v23, 0.0 }
 0x37d   : > { %1519 = vadd.xlane.f32.xlu1 %v1518_v25  ;;  %v1121_v26 = vadd.f32 %v2061_v22, %v1113_v24  ;;  %v1279_v25 = vld [vmem:[%s2987_s27 + $0x10] sm:$0xff] }
 0x37f   : > { %2132 = vmatmul.mubr.msk.f32.vlgmr.msra.gmra.mxu1 %vm1133_vm7, %v1121_v26  ;;  %v1428_v26 = vld [vmem:[%s2949_s13] sm:$0xff] }
 0x380   : > { %2135 = vmatpush3.msra.mxu1 %v1343_v27  ;;  %2142 = vmatprep.mubr.msk.f32.mxu1 %vm2231_vm1, %v2230_v2  ;;  %v2236_v27 = vmov 1  }
 0x381   : > { %2136 = vmatprep.subr.mxu1 %v2230_v2  ;;  %2172 = vset.pattern.permute.xlu0 %v2236_v27 }
 0x382   : > { %2137 = vmatpush3.msra.mxu1 %v1342_v28 }
 0x383   : > { %v2183_v30 = vpop.eup %2182  ;;  %2138 = vmatprep.subr.mxu1 %v2230_v2 }
 0x384   : > { %v1323_v33 = vmul.f32 %v2183_v30, %v2632_v53  ;;  %2139 = vmatpush3.msra.mxu1 %v1341_v29  ;;  %v1215_v53 = vld [vmem:[%s2986_s6 + $0x18] sm:$0xff]  ;;  %v1430_v29 = vld [vmem:[%s2949_s13 + $0x10] sm:$0xff] }
 0x385   : > { %2140 = vmatprep.subr.mxu1 %v2230_v2 }
 0x386   : > { %2141 = vmatpush3.msra.mxu1 %v1340_v31  ;;  %v1331_v35 = vmul.f32 %v2064_v32, %v1323_v33 }
 0x388   : > { %v1339_v36 = vadd.f32 %v2065_v34, %v1331_v35 }
 0x38a   : > { %2143 = vmatmul.mubr.msk.f32.vlgmr.msra.gmra.mxu1 %vm1133_vm7, %v1339_v36 }
 0x38b   : > { %1877 = vmatprep.mubr.f32.mxu1 %v2230_v2 }
 0x406   : > { %v1520_v38 = vpop.xlane.xlu1 %1519 }
 0x407   : > { %v1521_v39 = vmul.f32 0.03125, %v1520_v38 }
 0x409   : > { %v2705_v41 = vsub.f32 %v1516_v23, %v1521_v39  ;;  %v1280_v23 = vld [vmem:[%s2987_s27 + $0x18] sm:$0xff] }
 0x40b   : > { %v1523_v42 = vmul.f32 %v2705_v41, %v2705_v41 }
 0x40d   : > { %v1524_v43 = vsel %vm1517_vm6, %v1523_v42, 0.0  ;;  %v2068_v42 = vld [vmem:[%s2957_s21] ss:$0 sm:$0xff] }
 0x40e   : > { %1525 = vadd.xlane.f32.xlu1 %v1524_v43 }
 0x43f   : > { %v1203_v49 = vpop.f32.mrf.mxu1 }
 0x440   : > { %v1204_v50 = vadd.f32 %v2062_v48, %v1203_v49 }
 0x441   : > { %v2133_v51 = vpop.f32.mrf.mxu1 }
 0x442   : > { %v1208_v52 = vrot.slane %v1204_v50, 4 }
 0x444   : > { %v1211_v57 = vsel %vm1210_vm8, %v1204_v50, %v1208_v52 }
 0x445   : > { %v2738_v58 = vmul.f32 %v1215_v53, %v1211_v57  ;;  %v2740_v59 = vmul.f32 %v1214_v54, %v1211_v57  ;;  %v2742_v60 = vmul.f32 %v1213_v55, %v1211_v57  ;;  %v2758_v6 = vmul.f32 %v1212_v61, %v1211_v57 }
 0x447   : > { %v1223_v62 = vmul.f32 %v2738_v58, %v2738_v58  ;;  %v1222_v63 = vmul.f32 %v2740_v59, %v2740_v59  ;;  %v1221_v5 = vmul.f32 %v2742_v60, %v2742_v60  ;;  %v1220_v13 = vmul.f32 %v2758_v6, %v2758_v6 }
 0x449   : > { %v1234_v1 = vsel %vm1224_vm9, %v1223_v62, 0.0  ;;  %v1231_v3 = vsel %vm1224_vm9, %v1222_v63, 0.0  ;;  %v1228_v12 = vsel %vm1224_vm9, %v1221_v5, 0.0  ;;  %v1225_v18 = vsel %vm1224_vm9, %v1220_v13, 0.0 }
 0x44a   : > { %1235 = vadd.xlane.f32.xlu0 %v1234_v1  ;;  %v1420_v8 = vpop.f32.mrf.mxu1  ;;  %1232 = vadd.xlane.f32.xlu1 %v1231_v3 }
 0x44b   : > { %v1421_v9 = vadd.f32 %v2066_v0, %v1420_v8 }
 0x44c   : > { %v2144_v10 = vpop.f32.mrf.mxu1 }
 0x44d   : > { %v1425_v11 = vrot.slane %v1421_v9, 4 }
 0x44e   : > { %1229 = vadd.xlane.f32.xlu0 %v1228_v12 }
 0x44f   : > { %v1427_v16 = vsel %vm1210_vm8, %v1421_v9, %v1425_v11 }
 0x450   : > { %v2770_v17 = vmul.f32 %v1429_v14, %v1427_v16  ;;  %v2773_v19 = vmul.f32 %v1431_v15, %v1427_v16  ;;  %v2791_v28 = vmul.f32 %v1428_v26, %v1427_v16  ;;  %v2798_v31 = vmul.f32 %v1430_v29, %v1427_v16  ;;  %v1493_v29 = vld [vmem:[%s2950_s14 + $0x8] sm:$0xff] }
 0x452   : > { %1226 = vadd.xlane.f32.xlu0 %v1225_v18  ;;  %v1437_v20 = vmul.f32 %v2770_v17, %v2770_v17  ;;  %v1439_v22 = vmul.f32 %v2773_v19, %v2773_v19  ;;  %v1436_v30 = vmul.f32 %v2791_v28, %v2791_v28  ;;  %v1438_v33 = vmul.f32 %v2798_v31, %v2798_v31 }
 0x454   : > { %v1443_v21 = vsel %vm1133_vm7, %v1437_v20, 0.0  ;;  %v1449_v24 = vsel %vm1133_vm7, %v1439_v22, 0.0  ;;  %v1440_v32 = vsel %vm1133_vm7, %v1436_v30, 0.0  ;;  %v1446_v34 = vsel %vm1133_vm7, %v1438_v33, 0.0  ;;  %v1492_v30 = vld [vmem:[%s2950_s14] sm:$0xff] }
 0x455   : > { %v1647_v33 = vld [vmem:[%s2956_s20] sm:$0x7] }
 0x456   : > { %1444 = vadd.xlane.f32.xlu0 %v1443_v21 }
 0x45a   : > { %1450 = vadd.xlane.f32.xlu0 %v1449_v24  ;;  %v1278_v24 = vld [vmem:[%s2987_s27 + $0x8] sm:$0xff] }
 0x45b   : > { %1762 = vperm.xlu1 %2171, %v1280_v23  }
 0x45f   : > { %1757 = vperm.xlu1 %2171, %v1279_v25  }
 0x483   : > { %1441 = vadd.xlane.f32.xlu1 %v1440_v32 }
 0x487   : > { %1447 = vadd.xlane.f32.xlu1 %v1446_v34  ;;  %v1277_v34 = vld [vmem:[%s2987_s27] sm:$0xff] }
 0x497   : > { %v1526_v35 = vpop.xlane.xlu1 %1525 }
 0x498   : > { %v1527_v36 = vmul.f32 0.03125, %v1526_v35 }
 0x49a   : > { %v1528_v38 = vadd.f32 1e-05, %v1527_v36  ;;  %v1057_v36 = vld [vmem:[%s2988_s9] sm:$0xf]  ;;  %s761_s9 = scalar_lea.vmem %s2961_s25, %s2079_s4 }
 0x49c   : > { %2184 = vrsqrt.f32 %v1528_v38  ;;  %v1717_v38 = vsub.s32 3, %v2385_v4 }
 0x4a9   : > { %v2185_v39 = vpop.eup %2184 }
 0x4aa   : > { %v1530_v43 = vmul.f32 %v2185_v39, %v2705_v41 }
 0x4ac   : > { %v1538_v45 = vmul.f32 %v2068_v42, %v1530_v43  ;;  %v1714_v43 = vrot.slane %v1057_v36, %v2400_v7 }
 0x4ae   : > { %v1546_v46 = vadd.f32 %v2069_v44, %v1538_v45  ;;  %v1718_v44 = vrot.slane %v1057_v36, %v1717_v38  ;;  %v2070_v45 = vld [vmem:[%s2960_s24] ss:$0 sm:$0xff] }
 0x4b0   : > { %2154 = vmatmul.mubr.msk.f32.vlgmr.msra.gmra.mxu0 %vm1133_vm7, %v1546_v46 }
 0x4b1   : > { %1982 = vmatprep.mubr.f32.mxu0 %v2230_v2 }
 0x4d3   : > { %v1236_v47 = vpop.xlane.xlu0 %1235  ;;  %v1233_v48 = vpop.xlane.xlu1 %1232 }
 0x4d4   : > { %2186 = vrsqrt.f32 %v1236_v47  ;;  %vm1260_vm10 = vcmp.eq.f32.partialorder %v1236_v47, inf  ;;  %v1263_v53 = vand.u32 2147483648, %v1236_v47  ;;  %vm1262_vm11 = vcmp.eq.f32.partialorder %v1236_v47, 0.0 }
 0x4d5   : > { %2188 = vrsqrt.f32 %v1233_v48  ;;  %vm1253_vm12 = vcmp.eq.f32.partialorder %v1233_v48, inf  ;;  %v1256_v57 = vand.u32 2147483648, %v1233_v48  ;;  %vm1255_vm13 = vcmp.eq.f32.partialorder %v1233_v48, 0.0 }
 0x4d7   : > { %v1230_v49 = vpop.xlane.xlu0 %1229  ;;  %v1763_v35 = vpop.permute.xlu1 %1762 }
 0x4d8   : > { %2190 = vrsqrt.f32 %v1230_v49  ;;  %vm1246_vm14 = vcmp.eq.f32.partialorder %v1230_v49, inf  ;;  %v1249_v9 = vand.u32 2147483648, %v1230_v49  ;;  %vm1248_vm15 = vcmp.eq.f32.partialorder %v1230_v49, 0.0 }
 0x4db   : > { %v1227_v50 = vpop.xlane.xlu0 %1226 }
 0x4dc   : > { %2192 = vrsqrt.f32 %v1227_v50  ;;  %vm1239_vm0 = vcmp.eq.f32.partialorder %v1227_v50, inf  ;;  %v1242_v16 = vand.u32 2147483648, %v1227_v50  ;;  %vm1241_vm1 = vcmp.eq.f32.partialorder %v1227_v50, 0.0 }
 0x4df   : > { %v2849_v39 = vpop.xlane.xlu0 %1444 }
 0x4e0   : > { %vm1461_vm3 = vcmp.eq.f32.partialorder %v2849_v39, inf  ;;  %vm1463_vm5 = vcmp.eq.f32.partialorder %v2849_v39, 0.0 }
 0x4e1   : > { %v2187_v51 = vpop.eup %2186 }
 0x4e2   : > { %v2189_v41 = vpop.eup %2188  ;;  %v1259_v52 = vmul.f32 %v2187_v51, %v1236_v47 }
 0x4e3   : > { %v1252_v54 = vmul.f32 %v2189_v41, %v1233_v48  ;;  %v2859_v46 = vpop.xlane.xlu0 %1450 }
 0x4e4   : > { %v1261_v55 = vsel %vm1260_vm10, %v1236_v47, %v1259_v52  ;;  %vm1475_vm9 = vcmp.eq.f32.partialorder %v2859_v46, inf  ;;  %vm1477_vm10 = vcmp.eq.f32.partialorder %v2859_v46, 0.0 }
 0x4e5   : > { %v2191_v61 = vpop.eup %2190  ;;  %v1264_v62 = vsel %vm1262_vm11, %v1263_v53, %v1261_v55  ;;  %v1254_v63 = vsel %vm1253_vm12, %v1233_v48, %v1252_v54 }
 0x4e6   : > { %v1268_v0 = vmax.f32 %v1264_v62, 1e-12  ;;  %v1257_v1 = vsel %vm1255_vm13, %v1256_v57, %v1254_v63  ;;  %v1245_v3 = vmul.f32 %v2191_v61, %v1230_v49 }
 0x4e7   : > { %v1267_v5 = vmax.f32 %v1257_v1, 1e-12 }
 0x4e8   : > { %2194 = vrcp.f32 %v1268_v0  ;;  %v1247_v8 = vsel %vm1246_vm14, %v1230_v49, %v1245_v3  ;;  %v2870_v49 = vrot.slane %v1714_v43, %v2400_v7 }
 0x4e9   : > { %2196 = vrcp.f32 %v1267_v5  ;;  %v2193_v10 = vpop.eup %2192  ;;  %v1250_v11 = vsel %vm1248_vm15, %v1249_v9, %v1247_v8 }
 0x4ea   : > { %v1266_v12 = vmax.f32 %v1250_v11, 1e-12  ;;  %v1238_v13 = vmul.f32 %v2193_v10, %v1227_v50 }
 0x4ec   : > { %2198 = vrcp.f32 %v1266_v12  ;;  %v1240_v14 = vsel %vm1239_vm0, %v1227_v50, %v1238_v13  ;;  %v2873_v50 = vrot.slane %v1718_v44, %v2400_v7 }
 0x4ed   : > { %v1243_v21 = vsel %vm1241_vm1, %v1242_v16, %v1240_v14 }
 0x4ee   : > { %v1265_v22 = vmax.f32 %v1243_v21, 1e-12 }
 0x4f0   : > { %2200 = vrcp.f32 %v1265_v22 }
 0x4f5   : > { %v2195_v15 = vpop.eup %2194 }
 0x4f6   : > { %v1276_v18 = vmul.f32 %v2195_v15, %v2738_v58  ;;  %v2197_v20 = vpop.eup %2196  ;;  %v1495_v58 = vld [vmem:[%s2950_s14 + $0x18] sm:$0xff] }
 0x4f7   : > { %v1274_v23 = vmul.f32 %v2197_v20, %v2740_v59  ;;  %v1494_v59 = vld [vmem:[%s2950_s14 + $0x10] sm:$0xff] }
 0x4f8   : > { %1708 = vperm.xlu0 %2172, %v1276_v18   ;;  %1665 = vperm.xlu1 %2171, %v1276_v18  }
 0x4f9   : > { %v2199_v25 = vpop.eup %2198 }
 0x4fa   : > { %v1272_v26 = vmul.f32 %v2199_v25, %v2742_v60 }
 0x4fc   : > { %1660 = vperm.xlu1 %2171, %v1274_v23   ;;  %2173 = vset.pattern.permute.xlu0 %v2235_v37 }
 0x4fd   : > { %1752 = vperm.xlu0 %2173, %v1278_v24   ;;  %v2201_v32 = vpop.eup %2200 }
 0x4fe   : > { %v1270_v60 = vmul.f32 %v2201_v32, %v2758_v6  ;;  %v1758_v6 = vpop.permute.xlu1 %1757 }
 0x500   : > { %2174 = vset.pattern.permute.xlu1 %v2236_v27 }
 0x501   : > { %1704 = vperm.xlu1 %2174, %v1274_v23   ;;  %1798 = vperm.xlu0 %2173, %v1495_v58  }
 0x505   : > { %2175 = vset.pattern.permute.xlu1 %v2235_v37  ;;  %1793 = vperm.xlu0 %2173, %v1494_v59  }
 0x506   : > { %1655 = vperm.xlu1 %2175, %v1272_v26  }
 0x509   : > { %1788 = vperm.xlu0 %2173, %v1493_v29  }
 0x50a   : > { %2176 = vset.pattern.permute.xlu1 %v2236_v27 }
 0x50b   : > { %1700 = vperm.xlu1 %2176, %v1272_v26  }
 0x50c   : > { %v1442_v42 = vpop.xlane.xlu1 %1441 }
 0x50d   : > { %1783 = vperm.xlu0 %2173, %v1492_v30   ;;  %2202 = vrsqrt.f32 %v1442_v42  ;;  %vm1454_vm2 = vcmp.eq.f32.partialorder %v1442_v42, inf  ;;  %v1457_v25 = vand.u32 2147483648, %v1442_v42  ;;  %vm1456_vm4 = vcmp.eq.f32.partialorder %v1442_v42, 0.0 }
 0x50e   : > { %2204 = vrsqrt.f32 %v2849_v39 }
 0x50f   : > { %2177 = vset.pattern.permute.xlu1 %v2235_v37 }
 0x510   : > { %1650 = vperm.xlu1 %2177, %v1270_v60   ;;  %v2861_v47 = vpop.xlane.xlu1 %1447 }
 0x511   : > { %1912 = vperm.xlu0 %2173, %v1647_v33   ;;  %2206 = vrsqrt.f32 %v2861_v47  ;;  %vm1470_vm8 = vcmp.eq.f32.partialorder %v2861_v47, 0.0 }
 0x512   : > { %2208 = vrsqrt.f32 %v2859_v46 }
 0x514   : > { %2178 = vset.pattern.permute.xlu1 %v2236_v27  ;;  %v1676_v27 = vrot.slane %v1057_v36, %v908_v56  ;;  %v1631_v56 = vld [vmem:[%s2955_s19] sm:$0x7] }
 0x515   : > { %1696 = vperm.xlu1 %2178, %v1270_v60  }
 0x516   : > { %v2864_v48 = vrot.slane %v1676_v27, %v2516_v40 }
 0x519   : > { %2179 = vset.pattern.permute.xlu1 %v2235_v37  ;;  %v1672_v37 = vrot.slane %v1057_v36, %v2516_v40 }
 0x51a   : > { %1747 = vperm.xlu1 %2179, %v1277_v34   ;;  %v2203_v9 = vpop.eup %2202  ;;  %v1464_v34 = vand.u32 2147483648, %v2849_v39 }
 0x51b   : > { %v2876_v51 = vrot.slane %v1672_v37, %v2516_v40  ;;  %v2205_v12 = vpop.eup %2204  ;;  %v1453_v13 = vmul.f32 %v2203_v9, %v1442_v42 }
 0x51c   : > { %v1460_v21 = vmul.f32 %v2205_v12, %v2849_v39 }
 0x51d   : > { %v1455_v58 = vsel %vm1454_vm2, %v1442_v42, %v1453_v13 }
 0x51e   : > { %v2207_v24 = vpop.eup %2206  ;;  %v1462_v30 = vsel %vm1461_vm3, %v2849_v39, %v1460_v21  ;;  %v1458_v32 = vsel %vm1456_vm4, %v1457_v25, %v1455_v58  ;;  %v1471_v39 = vand.u32 2147483648, %v2861_v47 }
 0x51f   : > { %v2209_v36 = vpop.eup %2208  ;;  %v1465_v38 = vsel %vm1463_vm5, %v1464_v34, %v1462_v30  ;;  %v1480_v27 = vmax.f32 %v1458_v32, 1e-12 }
 0x521   : > { %2210 = vrcp.f32 %v1480_v27 }
 0x570   : > { %v1627_v4 = vpop.f32.mrf.mxu0 }
 0x571   : > { %v1628_v41 = vadd.f32 %v2070_v45, %v1627_v4  ;;  %v1474_v45 = vmul.f32 %v2209_v36, %v2859_v46 }
 0x572   : > { %v2155_v52 = vpop.f32.mrf.mxu0 }
 0x573   : > { %v2879_v53 = vmul.f32 %v1631_v56, %v1628_v41  ;;  %v1709_v54 = vpop.permute.xlu0 %1708  ;;  %v1666_v55 = vpop.permute.xlu1 %1665  ;;  %v1481_v52 = vmax.f32 %v1465_v38, 1e-12 }
 0x574   : > { %v1735_v57 = vmul.f32 %v2870_v49, %v1709_v54  ;;  %v1736_v61 = vmul.f32 %v2873_v50, %v1709_v54  ;;  %v1693_v62 = vmul.f32 %v2876_v51, %v1666_v55  ;;  %v1694_v7 = vmul.f32 %v2864_v48, %v1666_v55 }
 0x575   : > { %v1633_v40 = vmul.f32 %v2879_v53, %v2879_v53  ;;  %2212 = vrcp.f32 %v1481_v52 }
 0x576   : > { %v1743_v63 = vadd.f32 %v1735_v57, %v1693_v62  ;;  %v1744_v0 = vadd.f32 %v1736_v61, %v1694_v7  ;;  %v1476_v7 = vsel %vm1475_vm9, %v2859_v46, %v1474_v45 }
 0x577   : > { %v1661_v1 = vpop.permute.xlu1 %1660  ;;  %v1634_v3 = vsel %vm1517_vm6, %v1633_v40, 0.0  ;;  %vm1468_vm6 = vcmp.eq.f32.partialorder %v2861_v47, inf  ;;  %v1478_v40 = vand.u32 2147483648, %v2859_v46 }
 0x578   : > { %v1771_v5 = vadd.f32 %v1763_v35, %v1743_v63  ;;  %1635 = vadd.xlane.f32.xlu1 %v1634_v3  ;;  %v1772_v8 = vadd.f32 %v1763_v35, %v1744_v0  ;;  %v1691_v15 = vmul.f32 %v2876_v51, %v1661_v1  ;;  %v1692_v16 = vmul.f32 %v2864_v48, %v1661_v1  ;;  %v1753_v54 = vpop.permute.xlu0 %1752 }
 0x579   : > { %v1467_v35 = vmul.f32 %v2207_v24, %v2861_v47  ;;  %v1479_v3 = vsel %vm1477_vm10, %v1478_v40, %v1476_v7 }
 0x57a   : > { %v1779_v10 = vmax.f32 %v1771_v5, 0.0  ;;  %v1780_v11 = vmax.f32 %v1772_v8, 0.0 }
 0x57b   : > { %v1469_v4 = vsel %vm1468_vm6, %v2861_v47, %v1467_v35 }
 0x57c   : > { %1837 = vmatprep.subr.mxu1 %v1780_v11  ;;  %v1705_v14 = vpop.permute.xlu1 %1704  ;;  %v1472_v55 = vsel %vm1470_vm8, %v1471_v39, %v1469_v4  ;;  %v1483_v11 = vmax.f32 %v1479_v3, 1e-12  ;;  %v1799_v25 = vpop.permute.xlu0 %1798 }
 0x57d   : > { %v1733_v18 = vmul.f32 %v2870_v49, %v1705_v14  ;;  %v1734_v20 = vmul.f32 %v2873_v50, %v1705_v14  ;;  %1838 = vmatpush1.msra.mxu1 %v1779_v10  ;;  %v1482_v1 = vmax.f32 %v1472_v55, 1e-12 }
 0x57f   : > { %v1741_v22 = vadd.f32 %v1733_v18, %v1691_v15  ;;  %v1742_v23 = vadd.f32 %v1734_v20, %v1692_v16  ;;  %2214 = vrcp.f32 %v1482_v1  ;;  %v2211_v16 = vpop.eup %2210 }
 0x580   : > { %2216 = vrcp.f32 %v1483_v11 }
 0x581   : > { %v1769_v59 = vadd.f32 %v1758_v6, %v1741_v22  ;;  %v1656_v26 = vpop.permute.xlu1 %1655  ;;  %v1770_v29 = vadd.f32 %v1758_v6, %v1742_v23 }
 0x582   : > { %v1689_v42 = vmul.f32 %v2876_v51, %v1656_v26  ;;  %v1690_v43 = vmul.f32 %v2864_v48, %v1656_v26  ;;  %v2213_v21 = vpop.eup %2212 }
 0x583   : > { %v1777_v60 = vmax.f32 %v1769_v59, 0.0  ;;  %v1778_v33 = vmax.f32 %v1770_v29, 0.0 }
 0x585   : > { %1839 = vmatprep.subr.mxu1 %v1778_v33 }
 0x586   : > { %1840 = vmatpush1.msra.mxu1 %v1777_v60  ;;  %v1701_v6 = vpop.permute.xlu1 %1700  ;;  %v1794_v60 = vpop.permute.xlu0 %1793 }
 0x587   : > { %v1731_v44 = vmul.f32 %v2870_v49, %v1701_v6  ;;  %v1732_v37 = vmul.f32 %v2873_v50, %v1701_v6 }
 0x589   : > { %v1739_v56 = vadd.f32 %v1731_v44, %v1689_v42  ;;  %v1740_v41 = vadd.f32 %v1732_v37, %v1690_v43 }
 0x58a   : > { %v1789_v34 = vpop.permute.xlu0 %1788 }
 0x58b   : > { %v1767_v57 = vadd.f32 %v1753_v54, %v1739_v56  ;;  %v1651_v61 = vpop.permute.xlu1 %1650  ;;  %v1768_v62 = vadd.f32 %v1753_v54, %v1740_v41 }
 0x58c   : > { %v1687_v5 = vmul.f32 %v2876_v51, %v1651_v61  ;;  %v1688_v8 = vmul.f32 %v2864_v48, %v1651_v61  ;;  %v1485_v51 = vmul.f32 %v2211_v16, %v2791_v28  ;;  %v1487_v48 = vmul.f32 %v2213_v21, %v2770_v17 }
 0x58d   : > { %v1775_v63 = vmax.f32 %v1767_v57, 0.0  ;;  %v1776_v0 = vmax.f32 %v1768_v62, 0.0 }
 0x58e   : > { %v1784_v37 = vpop.permute.xlu0 %1783 }
 0x58f   : > { %1841 = vmatprep.subr.mxu1 %v1776_v0 }
 0x590   : > { %1842 = vmatpush1.msra.mxu1 %v1775_v63  ;;  %v1697_v47 = vpop.permute.xlu1 %1696 }
 0x591   : > { %v1729_v9 = vmul.f32 %v2870_v49, %v1697_v47  ;;  %v1730_v10 = vmul.f32 %v2873_v50, %v1697_v47  ;;  %v2215_v49 = vpop.eup %2214 }
 0x592   : > { %v1489_v50 = vmul.f32 %v2215_v49, %v2798_v31  ;;  %v2217_v22 = vpop.eup %2216  ;;  %v1913_v63 = vpop.permute.xlu0 %1912 }
 0x593   : > { %v1737_v12 = vadd.f32 %v1729_v9, %v1687_v5  ;;  %v1738_v13 = vadd.f32 %v1730_v10, %v1688_v8  ;;  %v1491_v28 = vmul.f32 %v2217_v22, %v2773_v19 }
 0x595   : > { %v1748_v14 = vpop.permute.xlu1 %1747 }
 0x596   : > { %v1765_v46 = vadd.f32 %v1748_v14, %v1737_v12  ;;  %v1766_v15 = vadd.f32 %v1748_v14, %v1738_v13 }
 0x598   : > { %v1773_v18 = vmax.f32 %v1765_v46, 0.0  ;;  %v1774_v20 = vmax.f32 %v1766_v15, 0.0 }
 0x59a   : > { %1843 = vmatprep.subr.mxu1 %v1774_v20 }
 0x59b   : > { %1844 = vmatpush1.msra.mxu1 %v1773_v18 }
 0x59c   : > { %2072 = vmatmul.mubr.msk.f32.vlgmr.msra.gmra.mxu1 %vm1133_vm7, %v1485_v51 }
 0x59d   : > { %1883 = vmatprep.mubr.f32.mxu1 %v2230_v2 }
 0x5a0   : > { %2073 = vmatmul.mubr.msk.f32.gmra.mxu1 %vm1133_vm7, %v1487_v48 }
 0x5a1   : > { %1889 = vmatprep.mubr.f32.mxu1 %v2230_v2 }
 0x5a4   : > { %2074 = vmatmul.mubr.msk.f32.gmra.mxu1 %vm1133_vm7, %v1489_v50 }
 0x5a5   : > { %1895 = vmatprep.mubr.f32.mxu1 %v2230_v2 }
 0x5a8   : > { %2075 = vmatmul.mubr.msk.f32.gmra.mxu1 %vm1133_vm7, %v1491_v28 }
 0x601   : > { %v1636_v23 = vpop.xlane.xlu1 %1635 }
 0x602   : > { %2218 = vrsqrt.f32 %v1636_v23  ;;  %vm1639_vm11 = vcmp.eq.f32.partialorder %v1636_v23, inf  ;;  %v1642_v59 = vand.u32 2147483648, %v1636_v23  ;;  %vm1641_vm12 = vcmp.eq.f32.partialorder %v1636_v23, 0.0 }
 0x60f   : > { %v2219_v24 = vpop.eup %2218 }
 0x610   : > { %v1638_v17 = vmul.f32 %v2219_v24, %v1636_v23 }
 0x612   : > { %v1640_v58 = vsel %vm1639_vm11, %v1636_v23, %v1638_v17 }
 0x613   : > { %v1643_v31 = vsel %vm1641_vm12, %v1642_v59, %v1640_v58 }
 0x614   : > { %v1644_v32 = vmax.f32 %v1643_v31, 1e-12 }
 0x616   : > { %2220 = vrcp.f32 %v1644_v32 }
 0x623   : > { %v2221_v55 = vpop.eup %2220 }
 0x624   : > { %v1646_v7 = vmul.f32 %v2221_v55, %v2879_v53 }
 0x65c   : > { %v1879_v26 = vpop.f32.mrf.mxu1 }
 0x65d   : > { %v1880_v41 = vadd.f32 %v1879_v26, %v1784_v37 }
 0x65e   : > { %v1881_v29 = vpop.f32.mrf.mxu1 }
 0x65f   : > { %v1882_v39 = vadd.f32 %v1881_v29, %v1784_v37  ;;  %v1902_v62 = vmax.f32 %v1880_v41, 0.0 }
 0x660   : > { %v1885_v30 = vpop.f32.mrf.mxu1 }
 0x661   : > { %v1886_v45 = vadd.f32 %v1885_v30, %v1789_v34  ;;  %v1903_v61 = vmax.f32 %v1882_v39, 0.0 }
 0x662   : > { %v1887_v2 = vpop.f32.mrf.mxu1 }
 0x663   : > { %v1888_v43 = vadd.f32 %v1887_v2, %v1789_v34  ;;  %v1904_v57 = vmax.f32 %v1886_v45, 0.0 }
 0x664   : > { %v1891_v33 = vpop.f32.mrf.mxu1 }
 0x665   : > { %v1892_v42 = vadd.f32 %v1891_v33, %v1794_v60  ;;  %v1905_v54 = vmax.f32 %v1888_v43, 0.0 }
 0x666   : > { %v1893_v19 = vpop.f32.mrf.mxu1 }
 0x667   : > { %v1894_v27 = vadd.f32 %v1893_v19, %v1794_v60  ;;  %v1906_v52 = vmax.f32 %v1892_v42, 0.0 }
 0x668   : > { %v1897_v35 = vpop.f32.mrf.mxu1 }
 0x669   : > { %v1898_v36 = vadd.f32 %v1897_v35, %v1799_v25  ;;  %v1907_v56 = vmax.f32 %v1894_v27, 0.0 }
 0x66a   : > { %v1899_v38 = vpop.f32.mrf.mxu1 }
 0x66b   : > { %v1900_v6 = vadd.f32 %v1899_v38, %v1799_v25  ;;  %v1908_v4 = vmax.f32 %v1898_v36, 0.0 }
 0x66d   : > { %v1909_v44 = vmax.f32 %v1900_v6, 0.0 }
 0x66f   : > { %1942 = vmatprep.subr.mxu0 %v1909_v44 }
 0x670   : > { %1943 = vmatpush1.msra.mxu0 %v1908_v4 }
 0x671   : > { %1944 = vmatprep.subr.mxu0 %v1907_v56 }
 0x672   : > { %1945 = vmatpush1.msra.mxu0 %v1906_v52 }
 0x673   : > { %1946 = vmatprep.subr.mxu0 %v1905_v54 }
 0x674   : > { %1947 = vmatpush1.msra.mxu0 %v1904_v57 }
 0x675   : > { %1948 = vmatprep.subr.mxu0 %v1903_v61 }
 0x676   : > { %1949 = vmatpush1.msra.mxu0 %v1902_v62 }
 0x677   : > { %2076 = vmatmul.mubr.msk.f32.vlgmr.msra.gmra.mxu0 %vm1133_vm7, %v1646_v7 }
 0x737   : > { %v1984_v40 = vpop.f32.mrf.mxu0 }
 0x738   : > { %v1985_v1 = vadd.f32 %v1984_v40, %v1913_v63 }
 0x739   : > { %v1986_v0 = vpop.f32.mrf.mxu0 }
 0x73a   : > { %v1987_v3 = vadd.f32 %v1986_v0, %v1913_v63 }
 0x73c   : > { %v1991_v47 = vcombine.low %v1985_v1, %v1987_v3 }
 0x73e   : > { %1993 = vst [vmem:[%s761_s9] sm:$0x77] %v1991_v47 }
 0x73f PF: > { %s35_s29 = sadd.s32 1, %s2228_s29  }
 0x740   : > { %p32_p4 = scmp.ge.s32.totalorder %s35_s29, 4  }
 0x742   :  { %34 = sbr.rel (!%p32_p4) target bundleno = 11 (0xb), region = 150 }

</bundles_post_ra>
